<compile_context>
chip_gen: v7x
topology: tpu7x:2x2x1
jax: 0.10.0
libtpu: 0.0.40
codegen_flags: <defaults>
</compile_context>

<pallas_src>
import functools

import jax
import jax.numpy as jnp
from jax import lax
from jax.experimental import pallas as pl
from jax.experimental.pallas import tpu as pltpu


CONFIG = dict(
    mel=4,
    pre_channels=32,
    kernel_size=[4, 4],          # per-USBlock upsampling kernel (stride = k//2)
    kernel_res=[3, 5],           # MRF resblock kernel sizes
    dilation=[[1, 2], [1, 3]],   # per-resblock dilation lists
)


def _round_up(n, m):
    return ((n + m - 1) // m) * m


# ----------------------------------------------------------------------------
# Static per-conv plan, shared by weight packing and the kernel
# ----------------------------------------------------------------------------
def _conv_plan(cfg):
    """List of static conv descriptors in execution order + weight-slab width."""
    plan = []
    n_res = len(cfg['kernel_res'])

    def add(name, cin, cout, K, dil, pad, up, slope, wscale, transposed=False):
        plan.append(dict(
            name=name, cin=cin, cout=cout,
            cin_p=_round_up(cin, 8), cout_p=_round_up(cout, 8),
            K=K, dil=dil, pad=pad, up=up, slope=slope,
            wscale=wscale, transposed=transposed))

    ch = cfg['pre_channels']
    add('pre', cfg['mel'], ch, 7, 1, 3, 1, None, 1.0)
    for i, k_up in enumerate(cfg['kernel_size']):
        stride = k_up // 2
        p_t = (k_up - stride) // 2
        conv_pad = k_up - 1 - p_t
        assert conv_pad >= 0, "transposed-conv padding too large for kernel"
        out = ch // 2
        # fold the PREVIOUS USBlock's MRF mean (1/n_res) into this weight
        add(f'up{i}', ch, out, k_up, 1, conv_pad, stride, 0.1,
            (1.0 / n_res) if i > 0 else 1.0, transposed=True)
        for r, kr in enumerate(cfg['kernel_res']):
            for d in cfg['dilation'][r]:
                assert ((kr - 1) * d) % 2 == 0, "residual needs 'same' length"
                add(f'res{i}.{r}.d{d}', out, out, kr, d, (kr * d - d) // 2,
                    1, 0.1, 1.0)
        ch = out
    # post conv: F.leaky_relu default slope 0.01; fold last MRF mean here
    add('post', ch, 1, 7, 1, 3, 1, 0.01, 1.0 / n_res)

    # weight-slab column layout (each band 128-lane aligned)
    off = 0
    for e in plan:
        e['w_off'] = off
        e['w_cols'] = e['K'] * e['cin_p']
        off += _round_up(e['w_cols'], 128)
    return plan, off


# ----------------------------------------------------------------------------
# In-kernel building blocks (all static shapes; traced once inside the kernel)
# ----------------------------------------------------------------------------
def _leaky(x, slope):
    return jnp.where(x > 0, x, slope * x)


def _zero_stuff(x, stride, pad, chunk=128):
    """Zero-stuff by `stride` and zero-pad both sides by `pad`.

    x: (C, T) -> (C, (T-1)*stride + 1 + 2*pad), x values at columns pad+t*stride.
    Done chunkwise with a fixed (<=chunk, <=(chunk-1)*stride+1) 0/1 matrix so the
    cost is O(C*T) (linear) and the mask stays tiny -- no O(T^2) blowup."""
    C, T = x.shape
    dt = x.dtype
    pieces = []
    if pad > 0:
        pieces.append(jnp.zeros((C, pad), dt))
    t0 = 0
    while t0 < T:
        L = min(chunk, T - t0)
        W = (L - 1) * stride + 1
        rows = lax.broadcasted_iota(jnp.int32, (L, W), 0)
        cols = lax.broadcasted_iota(jnp.int32, (L, W), 1)
        sel = (cols == rows * stride).astype(dt)
        blk = jnp.dot(x[:, t0:t0 + L], sel, preferred_element_type=jnp.float32)
        pieces.append(blk.astype(dt))
        t0 += L
        if t0 < T:
            pieces.append(jnp.zeros((C, stride - 1), dt))
    if pad > 0:
        pieces.append(jnp.zeros((C, pad), dt))
    return pieces[0] if len(pieces) == 1 else jnp.concatenate(pieces, axis=1)


def _conv_layer(x, w, b, *, K, dil=1, pad=0, up_stride=1, pre_slope=None,
                tap_accum=False):
    """Fused (optional leaky_relu) -> [zero-stuff] -> pad -> Conv1d.

    x: (C_in, T) f32 value.  w: (C_out_p, K*C_in_p) bf16 stacked weight
    (column order k*C_in + c_in).  b: (C_out_p, 1) f32.  Returns f32."""
    if pre_slope is not None:
        x = _leaky(x, pre_slope)                       # f32 VPU
    C_in = x.shape[0]
    # bf16 BEFORE the pad / im2col copies (halves copy traffic).  For the
    # stacked-concat path only when C_in is a multiple of the bf16 sublane
    # packing (16) so the tap concat stays tile-aligned; otherwise cast at the
    # matmul boundary (v5e has no bf16 VALU anyway, elementwise stays f32).
    early_bf16 = tap_accum or (C_in % 16 == 0)
    xb = x.astype(jnp.bfloat16) if early_bf16 else x

    if up_stride > 1:
        xb = _zero_stuff(xb, up_stride, pad)           # transposed-conv path
    elif pad > 0:
        z = jnp.zeros((C_in, pad), xb.dtype)
        xb = jnp.concatenate([z, xb, z], axis=1)       # plain 'same' pad: copies only

    T_p = xb.shape[1]
    T_out = T_p - dil * (K - 1)

    if tap_accum:
        # v7x: MRB accumulates in place -> K small matmuls, no sublane concat.
        acc = None
        for k in range(K):
            part = jnp.dot(w[:, k * C_in:(k + 1) * C_in],
                           xb[:, k * dil:k * dil + T_out],
                           preferred_element_type=jnp.float32)
            acc = part if acc is None else acc + part
    else:
        # v5e/v6e: stack the K lane-shifted taps on the sublane axis so the
        # whole conv is a single MXU matmul with contraction dim K*C_in.
        taps = [xb[:, k * dil:k * dil + T_out] for k in range(K)]
        xs = taps[0] if K == 1 else jnp.concatenate(taps, axis=0)
        acc = jnp.dot(w, xs.astype(jnp.bfloat16),
                      preferred_element_type=jnp.float32)
    return acc + b


# ----------------------------------------------------------------------------
# Fused Generator kernel: entire forward for one batch element per grid step
# ----------------------------------------------------------------------------
def _generator_kernel(x_ref, w_slab_ref, b_slab_ref, o_ref, *, cfg, plan,
                      use_tap_accum, t_out_pad):
    idx = 0

    def conv(x):
        nonlocal idx
        e = plan[idx]
        w = w_slab_ref[0:e['cout_p'], e['w_off']:e['w_off'] + e['w_cols']]
        b = b_slab_ref[0:e['cout_p'], idx:idx + 1]
        idx += 1
        return _conv_layer(x, w, b, K=e['K'], dil=e['dil'], pad=e['pad'],
                           up_stride=e['up'], pre_slope=e['slope'],
                           tap_accum=use_tap_accum)

    x = x_ref[...]                                 # (C_mel_pad, T) f32
    x = conv(x)                                    # pre conv (7, pad 3)

    for i, _k_up in enumerate(cfg['kernel_size']):
        x = conv(x)                                # ConvTranspose1d (stuff + conv)
        out = None
        for r, _kr in enumerate(cfg['kernel_res']):
            xb = x
            for _d in cfg['dilation'][r]:
                xb = conv(xb) + xb                 # ResBlock: conv(leaky(x)) + x
            out = xb if out is None else out + xb
        x = out                                    # MRF mean folded into next weights

    y = conv(x)                                    # post conv (rows 1..7 are pad)
    wav = jnp.tanh(y[0:1, :])
    if t_out_pad > wav.shape[1]:                   # lane-dense (unmasked) store
        wav = jnp.concatenate(
            [wav, jnp.zeros((1, t_out_pad - wav.shape[1]), wav.dtype)], axis=1)
    o_ref[...] = wav


# ----------------------------------------------------------------------------
# Wrapper: single fused pallas_call, batch on a "parallel" grid axis
# ----------------------------------------------------------------------------
def generator_forward(x, w_slab, b_slab, cfg):
    """x: (B, mel, T) f32 -> (B, 1, T_out) f32."""
    B, C_mel, T = x.shape
    plan, _total_cols = _conv_plan(cfg)
    cmel_p = plan[0]['cin_p']
    if cmel_p > C_mel:
        # one-time channel pad to a sublane multiple (weights are zero there)
        x = jnp.pad(x, ((0, 0), (0, cmel_p - C_mel), (0, 0)))

    # PyTorch ConvTranspose1d output length per USBlock
    T_out = T
    for k in cfg['kernel_size']:
        s = k // 2
        p = (k - s) // 2
        T_out = (T_out - 1) * s - 2 * p + k
    t_out_pad = _round_up(T_out, 128)              # lane-dense output store

    kind = jax.devices()[0].device_kind.lower()
    is_v7 = ('v7' in kind) or ('7x' in kind)
    vmem_limit = (48 if is_v7 else 100) << 20      # v7x: 64 MiB/TC physical

    kern = functools.partial(_generator_kernel, cfg=cfg, plan=plan,
                             use_tap_accum=is_v7, t_out_pad=t_out_pad)
    out = pl.pallas_call(
        kern,
        out_shape=jax.ShapeDtypeStruct((B, 1, t_out_pad), jnp.float32),
        grid_spec=pltpu.PrefetchScalarGridSpec(
            num_scalar_prefetch=0,
            grid=(B,),
            in_specs=[
                pl.BlockSpec((None, cmel_p, T), lambda b: (b, 0, 0)),
                # single packed weight/bias slabs, constant index map
                pl.BlockSpec(w_slab.shape, lambda b: (0, 0)),
                pl.BlockSpec(b_slab.shape, lambda b: (0, 0)),
            ],
            out_specs=pl.BlockSpec((None, 1, t_out_pad), lambda b: (b, 0, 0))),
        compiler_params=pltpu.CompilerParams(
            dimension_semantics=("parallel",),     # 2 TCs on v7x; harmless elsewhere
            vmem_limit_bytes=vmem_limit),
    )(x, w_slab, b_slab)
    return out[:, :, :T_out]


# ----------------------------------------------------------------------------
# One-time weight preparation: flip / transpose / scale-fold / pad / slab-pack
# ----------------------------------------------------------------------------
def pack_params(raw_params, cfg):
    plan, total_cols = _conv_plan(cfg)
    cmax = max(e['cout_p'] for e in plan)
    w_slab = jnp.zeros((cmax, total_cols), jnp.float32)
    b_slab = jnp.zeros((cmax, len(plan)), jnp.float32)

    for i, (e, (w, b)) in enumerate(zip(plan, raw_params)):
        if e['transposed']:
            # PyTorch ConvTranspose1d weight (C_in, C_out, K) -> effective
            # Conv1d weight (C_out, C_in, K) with flipped taps.
            w = jnp.transpose(w[:, :, ::-1], (1, 0, 2))
        w = w * e['wscale']          # fold MRF mean (leaky_relu is +-homogeneous)
        w = jnp.pad(w, ((0, e['cout_p'] - e['cout']),
                        (0, e['cin_p'] - e['cin']), (0, 0)))
        # (C_out_p, C_in_p, K) -> (C_out_p, K*C_in_p), column order k*C_in + c_in
        wm = jnp.transpose(w, (0, 2, 1)).reshape(e['cout_p'], e['w_cols'])
        w_slab = w_slab.at[0:e['cout_p'],
                           e['w_off']:e['w_off'] + e['w_cols']].set(wm)
        b_slab = b_slab.at[0:e['cout'], i].set(b)

    return w_slab.astype(jnp.bfloat16), b_slab


# ----------------------------------------------------------------------------
# Deterministic parameter init (effective weights; weight_norm folded in)
# ----------------------------------------------------------------------------
def init_params(key, cfg):
    plan, _ = _conv_plan(cfg)
    keys = jax.random.split(key, 2 * len(plan))
    raw = []
    for i, e in enumerate(plan):
        if e['transposed']:
            shape = (e['cin'], e['cout'], e['K'])   # PyTorch ConvTranspose1d layout
        else:
            shape = (e['cout'], e['cin'], e['K'])   # PyTorch Conv1d layout
        w = 0.1 * jax.random.normal(keys[2 * i], shape, jnp.float32)
        b = 0.01 * jax.random.normal(keys[2 * i + 1], (e['cout'],), jnp.float32)
        raw.append((w, b))
    return raw


# ----------------------------------------------------------------------------
# Pure-JAX (XLA) reference mirroring the PyTorch module, for a numerical check
# ----------------------------------------------------------------------------
def _reference_forward(x, raw_params, cfg):
    n_res = len(cfg['kernel_res'])
    dn = ('NCH', 'OIH', 'NCH')

    def conv(x, w, b, dil, pad):
        y = lax.conv_general_dilated(x, w, window_strides=(1,),
                                     padding=[(pad, pad)], rhs_dilation=(dil,),
                                     dimension_numbers=dn)
        return y + b[None, :, None]

    def conv_t(x, w, b, K, stride, p):
        w_eff = jnp.transpose(w[:, :, ::-1], (1, 0, 2))
        y = lax.conv_general_dilated(x, w_eff, window_strides=(1,),
                                     padding=[(K - 1 - p, K - 1 - p)],
                                     lhs_dilation=(stride,),
                                     dimension_numbers=dn)
        return y + b[None, :, None]

    it = iter(raw_params)
    w, b = next(it)
    x = conv(x, w, b, 1, 3)
    for _i, k_up in enumerate(cfg['kernel_size']):
        s = k_up // 2
        p = (k_up - s) // 2
        w, b = next(it)
        x = conv_t(jnp.where(x > 0, x, 0.1 * x), w, b, k_up, s, p)
        out = None
        for r, kr in enumerate(cfg['kernel_res']):
            xb = x
            for d in cfg['dilation'][r]:
                w, b = next(it)
                xb = conv(jnp.where(xb > 0, xb, 0.1 * xb), w, b, d,
                          (kr * d - d) // 2) + xb
            out = xb if out is None else out + xb
        x = out / n_res
    w, b = next(it)
    x = conv(jnp.where(x > 0, x, 0.01 * x), w, b, 1, 3)
    return jnp.tanh(x)


if __name__ == "__main__":
    cfg = CONFIG
    key = jax.random.PRNGKey(0)
    kx, kp = jax.random.split(key)

    B, T = 2, 16
    x = jax.random.normal(kx, (B, cfg['mel'], T), jnp.float32)   # NCL like PyTorch
    raw = init_params(kp, cfg)
    w_slab, b_slab = pack_params(raw, cfg)       # one-time weight prep

    fwd = jax.jit(functools.partial(generator_forward, cfg=cfg))
    y = fwd(x, w_slab, b_slab)
    jax.block_until_ready(y)

    T_out = T
    for k in cfg['kernel_size']:
        s = k // 2
        T_out = (T_out - 1) * s - 2 * ((k - s) // 2) + k
    assert y.shape == (B, 1, T_out), y.shape
    assert bool(jnp.all(jnp.isfinite(y)))
    assert bool(jnp.all(jnp.abs(y) <= 1.0))      # tanh output

    # numerical check vs a pure-f32 XLA reference (bf16 matmul boundary -> loose tol)
    y_ref = _reference_forward(x, raw, cfg)
    err = float(jnp.max(jnp.abs(y - y_ref)))
    assert err < 0.15, f"max abs err vs reference: {err}"
    print("KERNEL_OK")
</pallas_src>

<mosaic_0001>
module attributes {stable_mosaic.version = 11 : i64} {
  func.func @_generator_kernel(%arg0: i32, %arg1: memref<1x8x16xf32, #tpu.memory_space<vmem>>, %arg2: memref<32x1536xbf16, #tpu.memory_space<vmem>>, %arg3: memref<32x12xf32, #tpu.memory_space<vmem>>, %arg4: memref<1x1x128xf32, #tpu.memory_space<vmem>>) attributes {dimension_semantics = [#tpu.dimension_semantics<parallel>], iteration_bounds = array<i64: 2>, scalar_prefetch = 0 : i64, scratch_operands = 0 : i64, tpu.core_type = #tpu.core_type<tc>, window_params = [{transform_indices = @transform_0, window_bounds = array<i64: 1, 8, 16>}, {pipeline_mode = #tpu.pipeline_mode<synchronous>, transform_indices = @transform_1, window_bounds = array<i64: 32, 1536>}, {pipeline_mode = #tpu.pipeline_mode<synchronous>, transform_indices = @transform_2, window_bounds = array<i64: 32, 12>}, {transform_indices = @transform_3, window_bounds = array<i64: 1, 1, 128>}]} {
    %c0 = arith.constant 0 : index
    %c0_0 = arith.constant 0 : index
    %c0_1 = arith.constant 0 : index
    %0 = vector.load %arg1[%c0, %c0_0, %c0_1] : memref<1x8x16xf32, #tpu.memory_space<vmem>>, vector<1x8x16xf32>
    %1 = vector.shape_cast %0 : vector<1x8x16xf32> to vector<8x16xf32>
    %c0_2 = arith.constant 0 : index
    %c0_3 = arith.constant 0 : index
    %2 = vector.load %arg2[%c0_2, %c0_3] : memref<32x1536xbf16, #tpu.memory_space<vmem>>, vector<32x56xbf16>
    %c0_4 = arith.constant 0 : index
    %c0_5 = arith.constant 0 : index
    %3 = vector.load %arg3[%c0_4, %c0_5] : memref<32x12xf32, #tpu.memory_space<vmem>>, vector<32x1xf32>
    %cst = arith.constant 0.000000e+00 : f32
    %4 = vector.broadcast %cst : f32 to vector<8x3xf32>
    %5 = tpu.concatenate %4, %1, %4 in 1 : vector<8x3xf32>, vector<8x16xf32>, vector<8x3xf32> -> vector<8x22xf32>
    %6 = vector.extract_strided_slice %5 {offsets = [0, 0], sizes = [8, 16], strides = [1, 1]} : vector<8x22xf32> to vector<8x16xf32>
    %7 = vector.extract_strided_slice %5 {offsets = [0, 1], sizes = [8, 16], strides = [1, 1]} : vector<8x22xf32> to vector<8x16xf32>
    %8 = vector.extract_strided_slice %5 {offsets = [0, 2], sizes = [8, 16], strides = [1, 1]} : vector<8x22xf32> to vector<8x16xf32>
    %9 = vector.extract_strided_slice %5 {offsets = [0, 3], sizes = [8, 16], strides = [1, 1]} : vector<8x22xf32> to vector<8x16xf32>
    %10 = vector.extract_strided_slice %5 {offsets = [0, 4], sizes = [8, 16], strides = [1, 1]} : vector<8x22xf32> to vector<8x16xf32>
    %11 = vector.extract_strided_slice %5 {offsets = [0, 5], sizes = [8, 16], strides = [1, 1]} : vector<8x22xf32> to vector<8x16xf32>
    %12 = vector.extract_strided_slice %5 {offsets = [0, 6], sizes = [8, 16], strides = [1, 1]} : vector<8x22xf32> to vector<8x16xf32>
    %13 = tpu.concatenate %6, %7, %8, %9, %10, %11, %12 in 0 : vector<8x16xf32>, vector<8x16xf32>, vector<8x16xf32>, vector<8x16xf32>, vector<8x16xf32>, vector<8x16xf32>, vector<8x16xf32> -> vector<56x16xf32>
    %14 = arith.truncf %13 : vector<56x16xf32> to vector<56x16xbf16>
    %cst_6 = arith.constant dense<0.000000e+00> : vector<32x16xf32>
    %15 = tpu.matmul %2, %14, %cst_6 {dimension_numbers = #tpu.dot_dimension_numbers<[1], [0], [0], [1], [0, 0, 1, 1], [], []>} : vector<32x56xbf16>, vector<56x16xbf16>, vector<32x16xf32> -> vector<32x16xf32>
    %16 = vector.broadcast %3 : vector<32x1xf32> to vector<32x16xf32>
    %17 = arith.addf %15, %16 : vector<32x16xf32>
    %c0_7 = arith.constant 0 : index
    %c128 = arith.constant 128 : index
    %18 = vector.load %arg2[%c0_7, %c128] : memref<32x1536xbf16, #tpu.memory_space<vmem>>, vector<16x128xbf16>
    %c0_8 = arith.constant 0 : index
    %c1 = arith.constant 1 : index
    %19 = vector.load %arg3[%c0_8, %c1] : memref<32x12xf32, #tpu.memory_space<vmem>>, vector<16x1xf32>
    %cst_9 = arith.constant 0.000000e+00 : f32
    %20 = vector.broadcast %cst_9 : f32 to vector<32x16xf32>
    %21 = arith.cmpf ogt, %17, %20 : vector<32x16xf32>
    %cst_10 = arith.constant 1.000000e-01 : f32
    %22 = vector.broadcast %cst_10 : f32 to vector<32x16xf32>
    %23 = arith.mulf %22, %17 : vector<32x16xf32>
    %24 = arith.select %21, %17, %23 : vector<32x16xi1>, vector<32x16xf32>
    %25 = arith.truncf %24 : vector<32x16xf32> to vector<32x16xbf16>
    %cst_11 = arith.constant 0.000000e+00 : bf16
    %26 = vector.broadcast %cst_11 : bf16 to vector<32x2xbf16>
    %27 = tpu.iota {dimensions = array<i32: 0>} : vector<16x31xi32>
    %28 = tpu.iota {dimensions = array<i32: 1>} : vector<16x31xi32>
    %c2_i32 = arith.constant 2 : i32
    %29 = vector.broadcast %c2_i32 : i32 to vector<16x31xi32>
    %30 = arith.muli %27, %29 : vector<16x31xi32>
    %31 = arith.cmpi eq, %28, %30 : vector<16x31xi32>
    %32 = arith.extui %31 : vector<16x31xi1> to vector<16x31xi32>
    %33 = arith.sitofp %32 : vector<16x31xi32> to vector<16x31xf32>
    %34 = arith.truncf %33 : vector<16x31xf32> to vector<16x31xbf16>
    %cst_12 = arith.constant dense<0.000000e+00> : vector<32x31xf32>
    %35 = tpu.matmul %25, %34, %cst_12 {dimension_numbers = #tpu.dot_dimension_numbers<[1], [0], [0], [1], [0, 0, 1, 1], [], []>} : vector<32x16xbf16>, vector<16x31xbf16>, vector<32x31xf32> -> vector<32x31xf32>
    %36 = arith.truncf %35 : vector<32x31xf32> to vector<32x31xbf16>
    %cst_13 = arith.constant 0.000000e+00 : bf16
    %37 = vector.broadcast %cst_13 : bf16 to vector<32x2xbf16>
    %38 = tpu.concatenate %26, %36, %37 in 1 : vector<32x2xbf16>, vector<32x31xbf16>, vector<32x2xbf16> -> vector<32x35xbf16>
    %39 = vector.extract_strided_slice %38 {offsets = [0, 0], sizes = [32, 32], strides = [1, 1]} : vector<32x35xbf16> to vector<32x32xbf16>
    %40 = vector.extract_strided_slice %38 {offsets = [0, 1], sizes = [32, 32], strides = [1, 1]} : vector<32x35xbf16> to vector<32x32xbf16>
    %41 = vector.extract_strided_slice %38 {offsets = [0, 2], sizes = [32, 32], strides = [1, 1]} : vector<32x35xbf16> to vector<32x32xbf16>
    %42 = vector.extract_strided_slice %38 {offsets = [0, 3], sizes = [32, 32], strides = [1, 1]} : vector<32x35xbf16> to vector<32x32xbf16>
    %43 = tpu.concatenate %39, %40, %41, %42 in 0 : vector<32x32xbf16>, vector<32x32xbf16>, vector<32x32xbf16>, vector<32x32xbf16> -> vector<128x32xbf16>
    %cst_14 = arith.constant dense<0.000000e+00> : vector<16x32xf32>
    %44 = tpu.matmul %18, %43, %cst_14 {dimension_numbers = #tpu.dot_dimension_numbers<[1], [0], [0], [1], [0, 0, 1, 1], [], []>} : vector<16x128xbf16>, vector<128x32xbf16>, vector<16x32xf32> -> vector<16x32xf32>
    %45 = vector.broadcast %19 : vector<16x1xf32> to vector<16x32xf32>
    %46 = arith.addf %44, %45 : vector<16x32xf32>
    %c0_15 = arith.constant 0 : index
    %c256 = arith.constant 256 : index
    %47 = vector.load %arg2[%c0_15, %c256] : memref<32x1536xbf16, #tpu.memory_space<vmem>>, vector<16x48xbf16>
    %c0_16 = arith.constant 0 : index
    %c2 = arith.constant 2 : index
    %48 = vector.load %arg3[%c0_16, %c2] : memref<32x12xf32, #tpu.memory_space<vmem>>, vector<16x1xf32>
    %cst_17 = arith.constant 0.000000e+00 : f32
    %49 = vector.broadcast %cst_17 : f32 to vector<16x32xf32>
    %50 = arith.cmpf ogt, %46, %49 : vector<16x32xf32>
    %cst_18 = arith.constant 1.000000e-01 : f32
    %51 = vector.broadcast %cst_18 : f32 to vector<16x32xf32>
    %52 = arith.mulf %51, %46 : vector<16x32xf32>
    %53 = arith.select %50, %46, %52 : vector<16x32xi1>, vector<16x32xf32>
    %54 = arith.truncf %53 : vector<16x32xf32> to vector<16x32xbf16>
    %cst_19 = arith.constant 0.000000e+00 : bf16
    %55 = vector.broadcast %cst_19 : bf16 to vector<16x1xbf16>
    %56 = tpu.concatenate %55, %54, %55 in 1 : vector<16x1xbf16>, vector<16x32xbf16>, vector<16x1xbf16> -> vector<16x34xbf16>
    %57 = vector.extract_strided_slice %56 {offsets = [0, 0], sizes = [16, 32], strides = [1, 1]} : vector<16x34xbf16> to vector<16x32xbf16>
    %58 = vector.extract_strided_slice %56 {offsets = [0, 1], sizes = [16, 32], strides = [1, 1]} : vector<16x34xbf16> to vector<16x32xbf16>
    %59 = vector.extract_strided_slice %56 {offsets = [0, 2], sizes = [16, 32], strides = [1, 1]} : vector<16x34xbf16> to vector<16x32xbf16>
    %60 = tpu.concatenate %57, %58, %59 in 0 : vector<16x32xbf16>, vector<16x32xbf16>, vector<16x32xbf16> -> vector<48x32xbf16>
    %cst_20 = arith.constant dense<0.000000e+00> : vector<16x32xf32>
    %61 = tpu.matmul %47, %60, %cst_20 {dimension_numbers = #tpu.dot_dimension_numbers<[1], [0], [0], [1], [0, 0, 1, 1], [], []>} : vector<16x48xbf16>, vector<48x32xbf16>, vector<16x32xf32> -> vector<16x32xf32>
    %62 = vector.broadcast %48 : vector<16x1xf32> to vector<16x32xf32>
    %63 = arith.addf %61, %62 : vector<16x32xf32>
    %64 = arith.addf %63, %46 : vector<16x32xf32>
    %c0_21 = arith.constant 0 : index
    %c384 = arith.constant 384 : index
    %65 = vector.load %arg2[%c0_21, %c384] : memref<32x1536xbf16, #tpu.memory_space<vmem>>, vector<16x48xbf16>
    %c0_22 = arith.constant 0 : index
    %c3 = arith.constant 3 : index
    %66 = vector.load %arg3[%c0_22, %c3] : memref<32x12xf32, #tpu.memory_space<vmem>>, vector<16x1xf32>
    %cst_23 = arith.constant 0.000000e+00 : f32
    %67 = vector.broadcast %cst_23 : f32 to vector<16x32xf32>
    %68 = arith.cmpf ogt, %64, %67 : vector<16x32xf32>
    %cst_24 = arith.constant 1.000000e-01 : f32
    %69 = vector.broadcast %cst_24 : f32 to vector<16x32xf32>
    %70 = arith.mulf %69, %64 : vector<16x32xf32>
    %71 = arith.select %68, %64, %70 : vector<16x32xi1>, vector<16x32xf32>
    %72 = arith.truncf %71 : vector<16x32xf32> to vector<16x32xbf16>
    %cst_25 = arith.constant 0.000000e+00 : bf16
    %73 = vector.broadcast %cst_25 : bf16 to vector<16x2xbf16>
    %74 = tpu.concatenate %73, %72, %73 in 1 : vector<16x2xbf16>, vector<16x32xbf16>, vector<16x2xbf16> -> vector<16x36xbf16>
    %75 = vector.extract_strided_slice %74 {offsets = [0, 0], sizes = [16, 32], strides = [1, 1]} : vector<16x36xbf16> to vector<16x32xbf16>
    %76 = vector.extract_strided_slice %74 {offsets = [0, 2], sizes = [16, 32], strides = [1, 1]} : vector<16x36xbf16> to vector<16x32xbf16>
    %77 = vector.extract_strided_slice %74 {offsets = [0, 4], sizes = [16, 32], strides = [1, 1]} : vector<16x36xbf16> to vector<16x32xbf16>
    %78 = tpu.concatenate %75, %76, %77 in 0 : vector<16x32xbf16>, vector<16x32xbf16>, vector<16x32xbf16> -> vector<48x32xbf16>
    %cst_26 = arith.constant dense<0.000000e+00> : vector<16x32xf32>
    %79 = tpu.matmul %65, %78, %cst_26 {dimension_numbers = #tpu.dot_dimension_numbers<[1], [0], [0], [1], [0, 0, 1, 1], [], []>} : vector<16x48xbf16>, vector<48x32xbf16>, vector<16x32xf32> -> vector<16x32xf32>
    %80 = vector.broadcast %66 : vector<16x1xf32> to vector<16x32xf32>
    %81 = arith.addf %79, %80 : vector<16x32xf32>
    %82 = arith.addf %81, %64 : vector<16x32xf32>
    %c0_27 = arith.constant 0 : index
    %c512 = arith.constant 512 : index
    %83 = vector.load %arg2[%c0_27, %c512] : memref<32x1536xbf16, #tpu.memory_space<vmem>>, vector<16x80xbf16>
    %c0_28 = arith.constant 0 : index
    %c4 = arith.constant 4 : index
    %84 = vector.load %arg3[%c0_28, %c4] : memref<32x12xf32, #tpu.memory_space<vmem>>, vector<16x1xf32>
    %cst_29 = arith.constant 0.000000e+00 : f32
    %85 = vector.broadcast %cst_29 : f32 to vector<16x32xf32>
    %86 = arith.cmpf ogt, %46, %85 : vector<16x32xf32>
    %cst_30 = arith.constant 1.000000e-01 : f32
    %87 = vector.broadcast %cst_30 : f32 to vector<16x32xf32>
    %88 = arith.mulf %87, %46 : vector<16x32xf32>
    %89 = arith.select %86, %46, %88 : vector<16x32xi1>, vector<16x32xf32>
    %90 = arith.truncf %89 : vector<16x32xf32> to vector<16x32xbf16>
    %cst_31 = arith.constant 0.000000e+00 : bf16
    %91 = vector.broadcast %cst_31 : bf16 to vector<16x2xbf16>
    %92 = tpu.concatenate %91, %90, %91 in 1 : vector<16x2xbf16>, vector<16x32xbf16>, vector<16x2xbf16> -> vector<16x36xbf16>
    %93 = vector.extract_strided_slice %92 {offsets = [0, 0], sizes = [16, 32], strides = [1, 1]} : vector<16x36xbf16> to vector<16x32xbf16>
    %94 = vector.extract_strided_slice %92 {offsets = [0, 1], sizes = [16, 32], strides = [1, 1]} : vector<16x36xbf16> to vector<16x32xbf16>
    %95 = vector.extract_strided_slice %92 {offsets = [0, 2], sizes = [16, 32], strides = [1, 1]} : vector<16x36xbf16> to vector<16x32xbf16>
    %96 = vector.extract_strided_slice %92 {offsets = [0, 3], sizes = [16, 32], strides = [1, 1]} : vector<16x36xbf16> to vector<16x32xbf16>
    %97 = vector.extract_strided_slice %92 {offsets = [0, 4], sizes = [16, 32], strides = [1, 1]} : vector<16x36xbf16> to vector<16x32xbf16>
    %98 = tpu.concatenate %93, %94, %95, %96, %97 in 0 : vector<16x32xbf16>, vector<16x32xbf16>, vector<16x32xbf16>, vector<16x32xbf16>, vector<16x32xbf16> -> vector<80x32xbf16>
    %cst_32 = arith.constant dense<0.000000e+00> : vector<16x32xf32>
    %99 = tpu.matmul %83, %98, %cst_32 {dimension_numbers = #tpu.dot_dimension_numbers<[1], [0], [0], [1], [0, 0, 1, 1], [], []>} : vector<16x80xbf16>, vector<80x32xbf16>, vector<16x32xf32> -> vector<16x32xf32>
    %100 = vector.broadcast %84 : vector<16x1xf32> to vector<16x32xf32>
    %101 = arith.addf %99, %100 : vector<16x32xf32>
    %102 = arith.addf %101, %46 : vector<16x32xf32>
    %c0_33 = arith.constant 0 : index
    %c640 = arith.constant 640 : index
    %103 = vector.load %arg2[%c0_33, %c640] : memref<32x1536xbf16, #tpu.memory_space<vmem>>, vector<16x80xbf16>
    %c0_34 = arith.constant 0 : index
    %c5 = arith.constant 5 : index
    %104 = vector.load %arg3[%c0_34, %c5] : memref<32x12xf32, #tpu.memory_space<vmem>>, vector<16x1xf32>
    %cst_35 = arith.constant 0.000000e+00 : f32
    %105 = vector.broadcast %cst_35 : f32 to vector<16x32xf32>
    %106 = arith.cmpf ogt, %102, %105 : vector<16x32xf32>
    %cst_36 = arith.constant 1.000000e-01 : f32
    %107 = vector.broadcast %cst_36 : f32 to vector<16x32xf32>
    %108 = arith.mulf %107, %102 : vector<16x32xf32>
    %109 = arith.select %106, %102, %108 : vector<16x32xi1>, vector<16x32xf32>
    %110 = arith.truncf %109 : vector<16x32xf32> to vector<16x32xbf16>
    %cst_37 = arith.constant 0.000000e+00 : bf16
    %111 = vector.broadcast %cst_37 : bf16 to vector<16x6xbf16>
    %112 = tpu.concatenate %111, %110, %111 in 1 : vector<16x6xbf16>, vector<16x32xbf16>, vector<16x6xbf16> -> vector<16x44xbf16>
    %113 = vector.extract_strided_slice %112 {offsets = [0, 0], sizes = [16, 32], strides = [1, 1]} : vector<16x44xbf16> to vector<16x32xbf16>
    %114 = vector.extract_strided_slice %112 {offsets = [0, 3], sizes = [16, 32], strides = [1, 1]} : vector<16x44xbf16> to vector<16x32xbf16>
    %115 = vector.extract_strided_slice %112 {offsets = [0, 6], sizes = [16, 32], strides = [1, 1]} : vector<16x44xbf16> to vector<16x32xbf16>
    %116 = vector.extract_strided_slice %112 {offsets = [0, 9], sizes = [16, 32], strides = [1, 1]} : vector<16x44xbf16> to vector<16x32xbf16>
    %117 = vector.extract_strided_slice %112 {offsets = [0, 12], sizes = [16, 32], strides = [1, 1]} : vector<16x44xbf16> to vector<16x32xbf16>
    %118 = tpu.concatenate %113, %114, %115, %116, %117 in 0 : vector<16x32xbf16>, vector<16x32xbf16>, vector<16x32xbf16>, vector<16x32xbf16>, vector<16x32xbf16> -> vector<80x32xbf16>
    %cst_38 = arith.constant dense<0.000000e+00> : vector<16x32xf32>
    %119 = tpu.matmul %103, %118, %cst_38 {dimension_numbers = #tpu.dot_dimension_numbers<[1], [0], [0], [1], [0, 0, 1, 1], [], []>} : vector<16x80xbf16>, vector<80x32xbf16>, vector<16x32xf32> -> vector<16x32xf32>
    %120 = vector.broadcast %104 : vector<16x1xf32> to vector<16x32xf32>
    %121 = arith.addf %119, %120 : vector<16x32xf32>
    %122 = arith.addf %121, %102 : vector<16x32xf32>
    %123 = arith.addf %82, %122 : vector<16x32xf32>
    %c0_39 = arith.constant 0 : index
    %c768 = arith.constant 768 : index
    %124 = vector.load %arg2[%c0_39, %c768] : memref<32x1536xbf16, #tpu.memory_space<vmem>>, vector<8x64xbf16>
    %c0_40 = arith.constant 0 : index
    %c6 = arith.constant 6 : index
    %125 = vector.load %arg3[%c0_40, %c6] : memref<32x12xf32, #tpu.memory_space<vmem>>, vector<8x1xf32>
    %cst_41 = arith.constant 0.000000e+00 : f32
    %126 = vector.broadcast %cst_41 : f32 to vector<16x32xf32>
    %127 = arith.cmpf ogt, %123, %126 : vector<16x32xf32>
    %cst_42 = arith.constant 1.000000e-01 : f32
    %128 = vector.broadcast %cst_42 : f32 to vector<16x32xf32>
    %129 = arith.mulf %128, %123 : vector<16x32xf32>
    %130 = arith.select %127, %123, %129 : vector<16x32xi1>, vector<16x32xf32>
    %131 = arith.truncf %130 : vector<16x32xf32> to vector<16x32xbf16>
    %cst_43 = arith.constant 0.000000e+00 : bf16
    %132 = vector.broadcast %cst_43 : bf16 to vector<16x2xbf16>
    %133 = tpu.iota {dimensions = array<i32: 0>} : vector<32x63xi32>
    %134 = tpu.iota {dimensions = array<i32: 1>} : vector<32x63xi32>
    %c2_i32_44 = arith.constant 2 : i32
    %135 = vector.broadcast %c2_i32_44 : i32 to vector<32x63xi32>
    %136 = arith.muli %133, %135 : vector<32x63xi32>
    %137 = arith.cmpi eq, %134, %136 : vector<32x63xi32>
    %138 = arith.extui %137 : vector<32x63xi1> to vector<32x63xi32>
    %139 = arith.sitofp %138 : vector<32x63xi32> to vector<32x63xf32>
    %140 = arith.truncf %139 : vector<32x63xf32> to vector<32x63xbf16>
    %cst_45 = arith.constant dense<0.000000e+00> : vector<16x63xf32>
    %141 = tpu.matmul %131, %140, %cst_45 {dimension_numbers = #tpu.dot_dimension_numbers<[1], [0], [0], [1], [0, 0, 1, 1], [], []>} : vector<16x32xbf16>, vector<32x63xbf16>, vector<16x63xf32> -> vector<16x63xf32>
    %142 = arith.truncf %141 : vector<16x63xf32> to vector<16x63xbf16>
    %cst_46 = arith.constant 0.000000e+00 : bf16
    %143 = vector.broadcast %cst_46 : bf16 to vector<16x2xbf16>
    %144 = tpu.concatenate %132, %142, %143 in 1 : vector<16x2xbf16>, vector<16x63xbf16>, vector<16x2xbf16> -> vector<16x67xbf16>
    %145 = vector.extract_strided_slice %144 {offsets = [0, 0], sizes = [16, 64], strides = [1, 1]} : vector<16x67xbf16> to vector<16x64xbf16>
    %146 = vector.extract_strided_slice %144 {offsets = [0, 1], sizes = [16, 64], strides = [1, 1]} : vector<16x67xbf16> to vector<16x64xbf16>
    %147 = vector.extract_strided_slice %144 {offsets = [0, 2], sizes = [16, 64], strides = [1, 1]} : vector<16x67xbf16> to vector<16x64xbf16>
    %148 = vector.extract_strided_slice %144 {offsets = [0, 3], sizes = [16, 64], strides = [1, 1]} : vector<16x67xbf16> to vector<16x64xbf16>
    %149 = tpu.concatenate %145, %146, %147, %148 in 0 : vector<16x64xbf16>, vector<16x64xbf16>, vector<16x64xbf16>, vector<16x64xbf16> -> vector<64x64xbf16>
    %cst_47 = arith.constant dense<0.000000e+00> : vector<8x64xf32>
    %150 = tpu.matmul %124, %149, %cst_47 {dimension_numbers = #tpu.dot_dimension_numbers<[1], [0], [0], [1], [0, 0, 1, 1], [], []>} : vector<8x64xbf16>, vector<64x64xbf16>, vector<8x64xf32> -> vector<8x64xf32>
    %151 = vector.broadcast %125 : vector<8x1xf32> to vector<8x64xf32>
    %152 = arith.addf %150, %151 : vector<8x64xf32>
    %c0_48 = arith.constant 0 : index
    %c896 = arith.constant 896 : index
    %153 = vector.load %arg2[%c0_48, %c896] : memref<32x1536xbf16, #tpu.memory_space<vmem>>, vector<8x24xbf16>
    %c0_49 = arith.constant 0 : index
    %c7 = arith.constant 7 : index
    %154 = vector.load %arg3[%c0_49, %c7] : memref<32x12xf32, #tpu.memory_space<vmem>>, vector<8x1xf32>
    %cst_50 = arith.constant 0.000000e+00 : f32
    %155 = vector.broadcast %cst_50 : f32 to vector<8x64xf32>
    %156 = arith.cmpf ogt, %152, %155 : vector<8x64xf32>
    %cst_51 = arith.constant 1.000000e-01 : f32
    %157 = vector.broadcast %cst_51 : f32 to vector<8x64xf32>
    %158 = arith.mulf %157, %152 : vector<8x64xf32>
    %159 = arith.select %156, %152, %158 : vector<8x64xi1>, vector<8x64xf32>
    %cst_52 = arith.constant 0.000000e+00 : f32
    %160 = vector.broadcast %cst_52 : f32 to vector<8x1xf32>
    %161 = tpu.concatenate %160, %159, %160 in 1 : vector<8x1xf32>, vector<8x64xf32>, vector<8x1xf32> -> vector<8x66xf32>
    %162 = vector.extract_strided_slice %161 {offsets = [0, 0], sizes = [8, 64], strides = [1, 1]} : vector<8x66xf32> to vector<8x64xf32>
    %163 = vector.extract_strided_slice %161 {offsets = [0, 1], sizes = [8, 64], strides = [1, 1]} : vector<8x66xf32> to vector<8x64xf32>
    %164 = vector.extract_strided_slice %161 {offsets = [0, 2], sizes = [8, 64], strides = [1, 1]} : vector<8x66xf32> to vector<8x64xf32>
    %165 = tpu.concatenate %162, %163, %164 in 0 : vector<8x64xf32>, vector<8x64xf32>, vector<8x64xf32> -> vector<24x64xf32>
    %166 = arith.truncf %165 : vector<24x64xf32> to vector<24x64xbf16>
    %cst_53 = arith.constant dense<0.000000e+00> : vector<8x64xf32>
    %167 = tpu.matmul %153, %166, %cst_53 {dimension_numbers = #tpu.dot_dimension_numbers<[1], [0], [0], [1], [0, 0, 1, 1], [], []>} : vector<8x24xbf16>, vector<24x64xbf16>, vector<8x64xf32> -> vector<8x64xf32>
    %168 = vector.broadcast %154 : vector<8x1xf32> to vector<8x64xf32>
    %169 = arith.addf %167, %168 : vector<8x64xf32>
    %170 = arith.addf %169, %152 : vector<8x64xf32>
    %c0_54 = arith.constant 0 : index
    %c1024 = arith.constant 1024 : index
    %171 = vector.load %arg2[%c0_54, %c1024] : memref<32x1536xbf16, #tpu.memory_space<vmem>>, vector<8x24xbf16>
    %c0_55 = arith.constant 0 : index
    %c8 = arith.constant 8 : index
    %172 = vector.load %arg3[%c0_55, %c8] : memref<32x12xf32, #tpu.memory_space<vmem>>, vector<8x1xf32>
    %cst_56 = arith.constant 0.000000e+00 : f32
    %173 = vector.broadcast %cst_56 : f32 to vector<8x64xf32>
    %174 = arith.cmpf ogt, %170, %173 : vector<8x64xf32>
    %cst_57 = arith.constant 1.000000e-01 : f32
    %175 = vector.broadcast %cst_57 : f32 to vector<8x64xf32>
    %176 = arith.mulf %175, %170 : vector<8x64xf32>
    %177 = arith.select %174, %170, %176 : vector<8x64xi1>, vector<8x64xf32>
    %cst_58 = arith.constant 0.000000e+00 : f32
    %178 = vector.broadcast %cst_58 : f32 to vector<8x2xf32>
    %179 = tpu.concatenate %178, %177, %178 in 1 : vector<8x2xf32>, vector<8x64xf32>, vector<8x2xf32> -> vector<8x68xf32>
    %180 = vector.extract_strided_slice %179 {offsets = [0, 0], sizes = [8, 64], strides = [1, 1]} : vector<8x68xf32> to vector<8x64xf32>
    %181 = vector.extract_strided_slice %179 {offsets = [0, 2], sizes = [8, 64], strides = [1, 1]} : vector<8x68xf32> to vector<8x64xf32>
    %182 = vector.extract_strided_slice %179 {offsets = [0, 4], sizes = [8, 64], strides = [1, 1]} : vector<8x68xf32> to vector<8x64xf32>
    %183 = tpu.concatenate %180, %181, %182 in 0 : vector<8x64xf32>, vector<8x64xf32>, vector<8x64xf32> -> vector<24x64xf32>
    %184 = arith.truncf %183 : vector<24x64xf32> to vector<24x64xbf16>
    %cst_59 = arith.constant dense<0.000000e+00> : vector<8x64xf32>
    %185 = tpu.matmul %171, %184, %cst_59 {dimension_numbers = #tpu.dot_dimension_numbers<[1], [0], [0], [1], [0, 0, 1, 1], [], []>} : vector<8x24xbf16>, vector<24x64xbf16>, vector<8x64xf32> -> vector<8x64xf32>
    %186 = vector.broadcast %172 : vector<8x1xf32> to vector<8x64xf32>
    %187 = arith.addf %185, %186 : vector<8x64xf32>
    %188 = arith.addf %187, %170 : vector<8x64xf32>
    %c0_60 = arith.constant 0 : index
    %c1152 = arith.constant 1152 : index
    %189 = vector.load %arg2[%c0_60, %c1152] : memref<32x1536xbf16, #tpu.memory_space<vmem>>, vector<8x40xbf16>
    %c0_61 = arith.constant 0 : index
    %c9 = arith.constant 9 : index
    %190 = vector.load %arg3[%c0_61, %c9] : memref<32x12xf32, #tpu.memory_space<vmem>>, vector<8x1xf32>
    %cst_62 = arith.constant 0.000000e+00 : f32
    %191 = vector.broadcast %cst_62 : f32 to vector<8x64xf32>
    %192 = arith.cmpf ogt, %152, %191 : vector<8x64xf32>
    %cst_63 = arith.constant 1.000000e-01 : f32
    %193 = vector.broadcast %cst_63 : f32 to vector<8x64xf32>
    %194 = arith.mulf %193, %152 : vector<8x64xf32>
    %195 = arith.select %192, %152, %194 : vector<8x64xi1>, vector<8x64xf32>
    %cst_64 = arith.constant 0.000000e+00 : f32
    %196 = vector.broadcast %cst_64 : f32 to vector<8x2xf32>
    %197 = tpu.concatenate %196, %195, %196 in 1 : vector<8x2xf32>, vector<8x64xf32>, vector<8x2xf32> -> vector<8x68xf32>
    %198 = vector.extract_strided_slice %197 {offsets = [0, 0], sizes = [8, 64], strides = [1, 1]} : vector<8x68xf32> to vector<8x64xf32>
    %199 = vector.extract_strided_slice %197 {offsets = [0, 1], sizes = [8, 64], strides = [1, 1]} : vector<8x68xf32> to vector<8x64xf32>
    %200 = vector.extract_strided_slice %197 {offsets = [0, 2], sizes = [8, 64], strides = [1, 1]} : vector<8x68xf32> to vector<8x64xf32>
    %201 = vector.extract_strided_slice %197 {offsets = [0, 3], sizes = [8, 64], strides = [1, 1]} : vector<8x68xf32> to vector<8x64xf32>
    %202 = vector.extract_strided_slice %197 {offsets = [0, 4], sizes = [8, 64], strides = [1, 1]} : vector<8x68xf32> to vector<8x64xf32>
    %203 = tpu.concatenate %198, %199, %200, %201, %202 in 0 : vector<8x64xf32>, vector<8x64xf32>, vector<8x64xf32>, vector<8x64xf32>, vector<8x64xf32> -> vector<40x64xf32>
    %204 = arith.truncf %203 : vector<40x64xf32> to vector<40x64xbf16>
    %cst_65 = arith.constant dense<0.000000e+00> : vector<8x64xf32>
    %205 = tpu.matmul %189, %204, %cst_65 {dimension_numbers = #tpu.dot_dimension_numbers<[1], [0], [0], [1], [0, 0, 1, 1], [], []>} : vector<8x40xbf16>, vector<40x64xbf16>, vector<8x64xf32> -> vector<8x64xf32>
    %206 = vector.broadcast %190 : vector<8x1xf32> to vector<8x64xf32>
    %207 = arith.addf %205, %206 : vector<8x64xf32>
    %208 = arith.addf %207, %152 : vector<8x64xf32>
    %c0_66 = arith.constant 0 : index
    %c1280 = arith.constant 1280 : index
    %209 = vector.load %arg2[%c0_66, %c1280] : memref<32x1536xbf16, #tpu.memory_space<vmem>>, vector<8x40xbf16>
    %c0_67 = arith.constant 0 : index
    %c10 = arith.constant 10 : index
    %210 = vector.load %arg3[%c0_67, %c10] : memref<32x12xf32, #tpu.memory_space<vmem>>, vector<8x1xf32>
    %cst_68 = arith.constant 0.000000e+00 : f32
    %211 = vector.broadcast %cst_68 : f32 to vector<8x64xf32>
    %212 = arith.cmpf ogt, %208, %211 : vector<8x64xf32>
    %cst_69 = arith.constant 1.000000e-01 : f32
    %213 = vector.broadcast %cst_69 : f32 to vector<8x64xf32>
    %214 = arith.mulf %213, %208 : vector<8x64xf32>
    %215 = arith.select %212, %208, %214 : vector<8x64xi1>, vector<8x64xf32>
    %cst_70 = arith.constant 0.000000e+00 : f32
    %216 = vector.broadcast %cst_70 : f32 to vector<8x6xf32>
    %217 = tpu.concatenate %216, %215, %216 in 1 : vector<8x6xf32>, vector<8x64xf32>, vector<8x6xf32> -> vector<8x76xf32>
    %218 = vector.extract_strided_slice %217 {offsets = [0, 0], sizes = [8, 64], strides = [1, 1]} : vector<8x76xf32> to vector<8x64xf32>
    %219 = vector.extract_strided_slice %217 {offsets = [0, 3], sizes = [8, 64], strides = [1, 1]} : vector<8x76xf32> to vector<8x64xf32>
    %220 = vector.extract_strided_slice %217 {offsets = [0, 6], sizes = [8, 64], strides = [1, 1]} : vector<8x76xf32> to vector<8x64xf32>
    %221 = vector.extract_strided_slice %217 {offsets = [0, 9], sizes = [8, 64], strides = [1, 1]} : vector<8x76xf32> to vector<8x64xf32>
    %222 = vector.extract_strided_slice %217 {offsets = [0, 12], sizes = [8, 64], strides = [1, 1]} : vector<8x76xf32> to vector<8x64xf32>
    %223 = tpu.concatenate %218, %219, %220, %221, %222 in 0 : vector<8x64xf32>, vector<8x64xf32>, vector<8x64xf32>, vector<8x64xf32>, vector<8x64xf32> -> vector<40x64xf32>
    %224 = arith.truncf %223 : vector<40x64xf32> to vector<40x64xbf16>
    %cst_71 = arith.constant dense<0.000000e+00> : vector<8x64xf32>
    %225 = tpu.matmul %209, %224, %cst_71 {dimension_numbers = #tpu.dot_dimension_numbers<[1], [0], [0], [1], [0, 0, 1, 1], [], []>} : vector<8x40xbf16>, vector<40x64xbf16>, vector<8x64xf32> -> vector<8x64xf32>
    %226 = vector.broadcast %210 : vector<8x1xf32> to vector<8x64xf32>
    %227 = arith.addf %225, %226 : vector<8x64xf32>
    %228 = arith.addf %227, %208 : vector<8x64xf32>
    %229 = arith.addf %188, %228 : vector<8x64xf32>
    %c0_72 = arith.constant 0 : index
    %c1408 = arith.constant 1408 : index
    %230 = vector.load %arg2[%c0_72, %c1408] : memref<32x1536xbf16, #tpu.memory_space<vmem>>, vector<8x56xbf16>
    %c0_73 = arith.constant 0 : index
    %c11 = arith.constant 11 : index
    %231 = vector.load %arg3[%c0_73, %c11] : memref<32x12xf32, #tpu.memory_space<vmem>>, vector<8x1xf32>
    %cst_74 = arith.constant 0.000000e+00 : f32
    %232 = vector.broadcast %cst_74 : f32 to vector<8x64xf32>
    %233 = arith.cmpf ogt, %229, %232 : vector<8x64xf32>
    %cst_75 = arith.constant 0.00999999977 : f32
    %234 = vector.broadcast %cst_75 : f32 to vector<8x64xf32>
    %235 = arith.mulf %234, %229 : vector<8x64xf32>
    %236 = arith.select %233, %229, %235 : vector<8x64xi1>, vector<8x64xf32>
    %cst_76 = arith.constant 0.000000e+00 : f32
    %237 = vector.broadcast %cst_76 : f32 to vector<8x3xf32>
    %238 = tpu.concatenate %237, %236, %237 in 1 : vector<8x3xf32>, vector<8x64xf32>, vector<8x3xf32> -> vector<8x70xf32>
    %239 = vector.extract_strided_slice %238 {offsets = [0, 0], sizes = [8, 64], strides = [1, 1]} : vector<8x70xf32> to vector<8x64xf32>
    %240 = vector.extract_strided_slice %238 {offsets = [0, 1], sizes = [8, 64], strides = [1, 1]} : vector<8x70xf32> to vector<8x64xf32>
    %241 = vector.extract_strided_slice %238 {offsets = [0, 2], sizes = [8, 64], strides = [1, 1]} : vector<8x70xf32> to vector<8x64xf32>
    %242 = vector.extract_strided_slice %238 {offsets = [0, 3], sizes = [8, 64], strides = [1, 1]} : vector<8x70xf32> to vector<8x64xf32>
    %243 = vector.extract_strided_slice %238 {offsets = [0, 4], sizes = [8, 64], strides = [1, 1]} : vector<8x70xf32> to vector<8x64xf32>
    %244 = vector.extract_strided_slice %238 {offsets = [0, 5], sizes = [8, 64], strides = [1, 1]} : vector<8x70xf32> to vector<8x64xf32>
    %245 = vector.extract_strided_slice %238 {offsets = [0, 6], sizes = [8, 64], strides = [1, 1]} : vector<8x70xf32> to vector<8x64xf32>
    %246 = tpu.concatenate %239, %240, %241, %242, %243, %244, %245 in 0 : vector<8x64xf32>, vector<8x64xf32>, vector<8x64xf32>, vector<8x64xf32>, vector<8x64xf32>, vector<8x64xf32>, vector<8x64xf32> -> vector<56x64xf32>
    %247 = arith.truncf %246 : vector<56x64xf32> to vector<56x64xbf16>
    %cst_77 = arith.constant dense<0.000000e+00> : vector<8x64xf32>
    %248 = tpu.matmul %230, %247, %cst_77 {dimension_numbers = #tpu.dot_dimension_numbers<[1], [0], [0], [1], [0, 0, 1, 1], [], []>} : vector<8x56xbf16>, vector<56x64xbf16>, vector<8x64xf32> -> vector<8x64xf32>
    %249 = vector.broadcast %231 : vector<8x1xf32> to vector<8x64xf32>
    %250 = arith.addf %248, %249 : vector<8x64xf32>
    %251 = vector.extract_strided_slice %250 {offsets = [0, 0], sizes = [1, 64], strides = [1, 1]} : vector<8x64xf32> to vector<1x64xf32>
    %252 = math.tanh %251 : vector<1x64xf32>
    %cst_78 = arith.constant 0.000000e+00 : f32
    %253 = vector.broadcast %cst_78 : f32 to vector<1x64xf32>
    %254 = tpu.concatenate %252, %253 in 1 : vector<1x64xf32>, vector<1x64xf32> -> vector<1x128xf32>
    %c0_79 = arith.constant 0 : index
    %c0_80 = arith.constant 0 : index
    %c0_81 = arith.constant 0 : index
    %255 = vector.load %arg4[%c0_79, %c0_80, %c0_81] : memref<1x1x128xf32, #tpu.memory_space<vmem>>, vector<1x1x128xf32>
    %256 = vector.shape_cast %255 : vector<1x1x128xf32> to vector<1x128xf32>
    %257 = vector.shape_cast %254 : vector<1x128xf32> to vector<1x1x128xf32>
    tpu.vector_store %arg4[%c0_79, %c0_80, %c0_81], %257 {strides = array<i32>} : memref<1x1x128xf32, #tpu.memory_space<vmem>>, vector<1x1x128xf32>,
    return
  }
  func.func @transform_0(%arg0: i32) -> (i32, i32, i32) {
    %c0_i32 = arith.constant 0 : i32
    %c0_i32_0 = arith.constant 0 : i32
    %c0_i32_1 = arith.constant 0 : i32
    return %arg0, %c0_i32, %c0_i32_0 : i32, i32, i32
  }
  func.func @transform_1(%arg0: i32) -> (i32, i32) {
    %c0_i32 = arith.constant 0 : i32
    %c0_i32_0 = arith.constant 0 : i32
    %c0_i32_1 = arith.constant 0 : i32
    return %c0_i32, %c0_i32_0 : i32, i32
  }
  func.func @transform_2(%arg0: i32) -> (i32, i32) {
    %c0_i32 = arith.constant 0 : i32
    %c0_i32_0 = arith.constant 0 : i32
    %c0_i32_1 = arith.constant 0 : i32
    return %c0_i32, %c0_i32_0 : i32, i32
  }
  func.func @transform_3(%arg0: i32) -> (i32, i32, i32) {
    %c0_i32 = arith.constant 0 : i32
    %c0_i32_0 = arith.constant 0 : i32
    %c0_i32_1 = arith.constant 0 : i32
    return %arg0, %c0_i32, %c0_i32_0 : i32, i32, i32
  }
}

</mosaic_0001>

<bundles_post_ra>
// kernel: generator_forward.1
= control target key start
LH: loop header
LB: loop body
LE: loop exit
PB: predicated region body
PF: predicated region fallthrough
CT: control target
= control target key end

     0   :  { %8 = vsyncpa [#allocation3], 0  ;;  %s2644_s0 = inlined_call_operand.hbm [shape: f32[2,8,16], index: 0, kind: input, shape index: {}]   ;;  %s2645_s1 = inlined_call_operand.hbm [shape: bf16[32,1536], index: 1, kind: input, shape index: {}]   ;;  %s2646_s2 = inlined_call_operand.hbm [shape: f32[32,12], index: 2, kind: input, shape index: {}]   ;;  %s2647_s3 = inlined_call_operand.hbm [shape: f32[2,1,128], index: 3, kind: output, shape index: {}]  }
   0x1   :  { %10 = vsyncpa [#allocation3 + $0x1], 0 }
   0x2   :  { %11 = vsyncpa [#allocation6], 0 }
   0x3   :  { %12 = vsyncpa [#allocation4], 0 }
   0x4   :  { %14 = vsyncpa [#allocation4 + $0x1], 0  ;;  %s2127_s12 = smov 0   ;;  %s2129_s13 = smov 0  }
   0x5   :  { %s2131_s14 = smov 0   ;;  %s2133_s15 = smov 0  }
   0x6 LB: > { %s2148_s16 = sadd.s32 4294967295, %s2069_s15   ;;  %s1482_s17 = sadd.s32 4294967294, %s2069_s15   ;;  %s2069_s15 = sphi %s2133_s15, %s2671_s15   ;;  %s2065_s14 = sphi %s2131_s14, %s2670_s14   ;;  %s2061_s13 = sphi %s2129_s13, %s2669_s13   ;;  %s2057_s12 = sphi %s2127_s12, %s2668_s12  }
   0x7   : > { %p40_p0 = scmp.ne.s32.totalorder %s2061_s13, %s2057_s12  ;;  %p2648_p1 = scmp.eq.s32.totalorder %s2148_s16, 0 }
   0x8   : > { %p112_p3 = scmp.eq.s32.totalorder %s1482_s17, 1  ;;  %p1483_p5 = scmp.ge.s32.totalorder %s2069_s15, 1 }
   0x9   : > { %p2157_p4 = por %p2648_p1, %p40_p0  ;;  %p119_p7 = scmp.lt.s32.totalorder %s2069_s15, 3 }
   0xa   : > { %p2162_p6 = por %p112_p3, %p40_p0  ;;  %s2071_s21 = smov [#allocation5]  }
   0xb   : > { %s2651_s18 = scalar_select %p2157_p4, 1, 0 }
   0xc   : > { %s2652_s19 = scalar_select %p2162_p6, 1, 0 }
   0xd   : > { %p2167_p8 = pnand %p1483_p5, %p119_p7  ;;  %s131_s22 = sshll.u32 %s2071_s21, 4  ;;  %s2171_s22 = int_to_ptr.vmem [resolvable:$true] %s131_s22 }
   0xe   : > { %s2072_s24 = smov [#allocation7]   ;;  %s1913_s28 = scalar_lea.hbm %s2645_s1, 3072 }
   0xf   : > { %p1798_p9 = pneg %p2167_p8  ;;  %s144_s25 = sshll.u32 %s2072_s24, 4  ;;  %s2182_s25 = int_to_ptr.vmem [resolvable:$true] %s144_s25 }
  0x10   : > { %p1914_p12 = scmp.ne.s32.totalorder %s2645_s1, %s1913_s28  ;;  %p1920_p5 = scmp.lt.u32.totalorder %s1913_s28, %s2645_s1 }
  0x11   : > { %p2178_p11 = pnand %p1798_p9, %p2648_p1 }
  0x13   : > { %p1915_p13 = pneg %p2178_p11 }
  0x15   : > { %p1916_p0 = pnand %p1915_p13, %p1914_p12 }
  0x17   : > { %p1917_p3 = pneg %p1916_p0 }
  0x19   : > { %p1922_p7 = pnand %p1920_p5, %p1917_p3 }
  0x1b   : > { %1925 = shalt.err (!%p1922_p7)
}
  0x1c   : > { %s1926_s6 = scalar_lea.vmem %s2171_s22, 3072  ;;  %p1934_p2 = scmp.lt.s32.totalorder %s2171_s22, %s2171_s22 }
  0x1d   : > { %p1927_p9 = scmp.ne.s32.totalorder %s2171_s22, %s1926_s6  ;;  %p1935_p12 = scmp.lt.s32.totalorder %s1926_s6, %s1926_s6 }
  0x1f   : > { %p1929_p10 = pnand %p1927_p9, %p1915_p13  ;;  %p1936_p0 = por %p1935_p12, %p1934_p2 }
  0x21   : > { %p1930_p1 = pneg %p1929_p10 }
  0x23   : > { %p1937_p6 = pnand %p1936_p0, %p1930_p1 }
  0x25   : > { %1940 = shalt.err (!%p1937_p6)
}
  0x26   : > { %s2073_s7 = smov 768   ;;  %s2074_s8 = smov 48  }
  0x27   : > { %1801 = dma.hbm_to_vmem [thread:$0]  (!%p2178_p11), %s2645_s1, 3072, %s2171_s22, [#allocation6], %s2073_s7, %s2073_s7, %s2074_s8  }
  0x28   : > { %s1941_s21 = scalar_lea.hbm %s2646_s2, 512 }
  0x29   : > { %p1942_p2 = scmp.ne.s32.totalorder %s2646_s2, %s1941_s21  ;;  %p1948_p10 = scmp.lt.u32.totalorder %s1941_s21, %s2646_s2 }
  0x2b   : > { %p1944_p1 = pnand %p1942_p2, %p1915_p13 }
  0x2d   : > { %p1945_p6 = pneg %p1944_p1 }
  0x2f   : > { %p1950_p3 = pnand %p1948_p10, %p1945_p6 }
  0x31   : > { %1953 = shalt.err (!%p1950_p3)
}
  0x32   : > { %s1954_s22 = scalar_lea.vmem %s2182_s25, 512  ;;  %p1962_p12 = scmp.lt.s32.totalorder %s2182_s25, %s2182_s25 }
  0x33   : > { %p1955_p5 = scmp.ne.s32.totalorder %s2182_s25, %s1954_s22  ;;  %p1963_p0 = scmp.lt.s32.totalorder %s1954_s22, %s1954_s22 }
  0x35   : > { %p1957_p7 = pnand %p1955_p5, %p1915_p13  ;;  %p1964_p2 = por %p1963_p0, %p1962_p12 }
  0x37   : > { %p1958_p9 = pneg %p1957_p7 }
  0x39   : > { %p1965_p1 = pnand %p1964_p2, %p1958_p9 }
  0x3b   : > { %1968 = shalt.err (!%p1965_p1)
}
  0x3c   : > { %s2075_s29 = smov 128   ;;  %s2076_s30 = smov 8  }
  0x3d   : > { %1804 = dma.hbm_to_vmem [thread:$0]  (!%p2178_p11), %s2646_s2, 512, %s2182_s25, [#allocation6], %s2075_s29, %s2075_s29, %s2076_s30  }
  0x3e   : > { %s2237_s6 = sadd.s32 1, %s2069_s15   ;;  %s27_s8 = sadd.s32 1, %s2065_s14 }
  0x3f   : > { %s24_s7 = ssub.s32 %s2069_s15, %s2237_s6  ;;  %p34_p6 = scmp.ne.s32.totalorder %s2065_s14, %s2061_s13 }
  0x40   : > { %p25_p13 = scmp.eq.s32.totalorder %s24_s7, 0  ;;  %p35_p10 = scmp.eq.s32.totalorder %s2069_s15, 0 }
  0x41   : > { %p2655_p5 = scmp.eq.s32.totalorder %s2148_s16, 1  ;;  %p1815_p9 = scmp.lt.s32.totalorder %s2069_s15, 2 }
  0x42   : > { %s2246_s9 = scalar_select %p25_p13, %s2065_s14, %s27_s8  }
  0x43   : > { %p36_p3 = por %p35_p10, %p34_p6  ;;  %p2250_p7 = por %p2655_p5, %p34_p6 }
  0x44   : > { %s158_s23 = sand.u32 1, %s2065_s14   ;;  %s1488_s25 = sshll.u32 %s2069_s15, 7 }
  0x45   : > { %s2656_s10 = scalar_select %p2250_p7, 1, 0 }
  0x46   : > { %s1487_s11 = sshll.u32 %s158_s23, 3  ;;  %s2260_s24 = scalar_lea.hbm %s2644_s0, %s1488_s25 }
  0x47   : > { %s162_s26 = scalar_lea.vmem [#allocation2], %s1487_s11  ;;  %p2264_p11 = pnand %p1815_p9, %p36_p3 }
  0x48   : > { %s169_s27 = sshll.u32 %s162_s26, 4  ;;  %s159_s22 = scalar_lea.sflag [#allocation3], %s158_s23  ;;  %s2262_s27 = int_to_ptr.vmem [resolvable:$true] %s169_s27 }
  0x49   : > { %s1969_s29 = scalar_lea.hbm %s2260_s24, 128  ;;  %p1971_p0 = pneg %p2264_p11 }
  0x4a   : > { %p1970_p12 = scmp.ne.s32.totalorder %s2260_s24, %s1969_s29  ;;  %s1974_s5 = scalar_lea.hbm %s2644_s0, 256 }
  0x4b   : > { %p1975_p13 = scmp.lt.u32.totalorder %s2260_s24, %s2644_s0  ;;  %p1976_p6 = scmp.lt.u32.totalorder %s1974_s5, %s1969_s29 }
  0x4c   : > { %p1972_p2 = pnand %p1971_p0, %p1970_p12  ;;  %p1978_p3 = scmp.lt.u32.totalorder %s1969_s29, %s2260_s24 }
  0x4d   : > { %p1977_p10 = por %p1976_p6, %p1975_p13 }
  0x4e   : > { %p1973_p1 = pneg %p1972_p2 }
  0x4f   : > { %p1979_p5 = por %p1978_p3, %p1977_p10 }
  0x51   : > { %p1980_p9 = pnand %p1979_p5, %p1973_p1 }
  0x53   : > { %1983 = shalt.err (!%p1980_p9)
}
  0x54   : > { %s1984_s23 = scalar_lea.vmem %s2262_s27, 128  ;;  %s2077_s11 = smov [#allocation2]  }
  0x55   : > { %p1985_p12 = scmp.ne.s32.totalorder %s2262_s27, %s1984_s23  ;;  %s1989_s25 = sshll.u32 %s2077_s11, 4  ;;  %s1990_s25 = int_to_ptr.vmem [resolvable:$false] %s1989_s25 }
  0x56   : > { %s1991_s17 = scalar_lea.vmem %s1990_s25, 256  ;;  %p1992_p4 = scmp.lt.s32.totalorder %s2262_s27, %s1990_s25 }
  0x57   : > { %p1987_p2 = pnand %p1985_p12, %p1971_p0  ;;  %p1993_p13 = scmp.lt.s32.totalorder %s1991_s17, %s1984_s23 }
  0x59   : > { %p1988_p7 = pneg %p1987_p2  ;;  %p1994_p6 = por %p1993_p13, %p1992_p4 }
  0x5b   : > { %p1995_p10 = pnand %p1994_p6, %p1988_p7 }
  0x5d   : > { %1998 = shalt.err (!%p1995_p10)
}
  0x5e   : > { %1808 = dma.hbm_to_vmem [thread:$0]  (!%p2264_p11), %s2260_s24, 128, %s2262_s27, %s159_s22  }
  0x5f   : > { %178 = sbr.rel (%p2167_p8) target bundleno = 4311 (0x10d7), region = 32  ;;  %s2296_s21 = sand.u32 (!%p2167_p8), 1, %s2061_s13  }
  0x60   : > { %s1490_s26 = sshll.u32 (!%p2167_p8), %s2296_s21, 3  ;;  %s181_s29 = scalar_lea.sflag (!%p2167_p8), [#allocation3], %s2296_s21 }
  0x61   : > { %s184_s30 = scalar_lea.vmem (!%p2167_p8), [#allocation2], %s1490_s26  ;;  %p2658_p4 = scmp.ne.s32.totalorder (!%p2167_p8), %s2651_s18, 0 }
  0x66   : > { %2044 = dma.done.wait (%p2658_p4), %s181_s29, 128  }
  0x67   : > { %2046 = vsyncadd (%p2658_p4), %s181_s29, 4294967168  ;;  %p2659_p7 = scmp.eq.s32.totalorder %s2148_s16, 0 }
  0x69   : > { %2048 = dma.done.wait (%p2659_p7), [#allocation6], 3584   ;;  %p2660_p11 = pmov %p2659_p7 }
  0x6a   : > { %v215_v0 = vld [vmem:[%s184_s30] sm:$0xff]  ;;  %s2078_s20 = smov 3   ;;  %vm228_vm0 = vcmask 23552   ;;  %vm230_vm1 = vcmask 154624   ;;  %s2079_s24 = smov 126   ;;  %vm285_vm2 = vcmask 457728   ;;  %v363_v22 = vlaneseq }
  0x6b   : > { %2050 = vsyncadd (%p2660_p11), [#allocation6], 4294963712  ;;  %225 = vrot.lane.b32.xlu0 %v215_v0, %s2078_s20  ;;  %s2080_s18 = smov 127   ;;  %v1903_v4 = vld [vmem:[#allocation5] ss:$48 sps:$4 sm:$0xff]   ;;  %s2081_s27 = smov 125  }
  0x6c   : > { %s2082_s28 = smov 124   ;;  %1619 = vmatprep.mubr.msk.bf16.mxu0 %vm285_vm2, %v1903_v4  ;;  %v2083_v5 = vmov 0   ;;  %s2084_s22 = smov 123   ;;  %v2318_v6 = vld [vmem:[#allocation7] sm:$0xff]  ;;  %v2320_v7 = vld [vmem:[#allocation7 + $0x8] sm:$0xff]  ;;  %v222_v8 = vld [vmem:[#allocation7 + $0x10] sm:$0xff] }
  0x6d   : > { %1885 = vset.pattern.permute.xlu1 %v2083_v5  ;;  %1886 = vset.pattern.permute.xlu0 %v2083_v5  ;;  %s2085_s4 = smov 122   ;;  %v223_v9 = vld [vmem:[#allocation7 + $0x18] sm:$0xff]  ;;  %vm2086_vm3 = vmmov 1   ;;  %vm292_vm5 = vcmask 1043456   ;;  %v1904_v21 = vld [vmem:[#allocation5 + $0x60] ss:$48 sps:$4 sm:$0xff]  }
  0x6e   : > { %vm1495_vm4 = vmpackc.low %vm2086_vm3, %vm230_vm1  ;;  %v2329_v23 = vshrl.u32 %v363_v22, 7  ;;  %v2332_v25 = vand.u32 127, %v363_v22  ;;  %v2087_v29 = vmov 1.0|1.0   ;;  %vm377_vm13 = vcmask 130048   ;;  %s2089_s5 = smov 2  }
  0x6f   : > { %v2088_v52 = vmov 0.0   ;;  %vm441_vm14 = vcmask 15360   ;;  %vm447_vm15 = vcmask 269312   ;;  %s2092_s7 = smov 1   ;;  %s2096_s8 = smov 6  }
  0x70   : > { %v365_v24 = vadd.s32 8, %v2329_v23  ;;  %v368_v26 = vmul.u32 2, %v2329_v23  ;;  %s2097_s23 = smov 116   ;;  %s2098_s11 = smov 119  }
  0x71   : > { %s1543_s25 = sshll.u32 %s2148_s16, 4  ;;  %s213_s17 = scalar_lea.vmem [#allocation8], %s2296_s21 }
  0x72   : > { %v369_v27 = vmul.u32 2, %v365_v24  ;;  %vm370_vm6 = vcmp.eq.s32.totalorder %v2332_v25, %v368_v26  ;;  %s1397_s26 = sshll.u32 %s213_s17, 4  ;;  %p2665_p0 = scmp.ne.s32.totalorder %s2656_s10, 0  ;;  %s2601_s26 = int_to_ptr.vmem [resolvable:$true] %s1397_s26 }
  0x73   : > { %s2106_s16 = smov [#allocation8]  }
  0x74   : > { %vm371_vm7 = vcmp.eq.s32.totalorder %v2332_v25, %v369_v27 }
  0x75   : > { %vm2337_vm8 = vmpackc.low %vm371_vm7, %vm370_vm6  ;;  %vm541_vm7 = vcmask 7168  }
  0x76   : > { %1623 = vmatprep.subr.msk.bf16.mxu1 %vm2337_vm8, %v2087_v29 }
  0x77   : > { %1624 = vmatpush3.bf16.msk.msra.mxu1 %vm2337_vm8, %v2087_v29 }
  0x78   : > { %1629 = vmatprep.subr.bf16.mxu1 %v2088_v52 }
  0xdd   : > { %v226_v1 = vpop.permute.xlu0 %225 }
  0xde   : > { %v229_v2 = vsel %vm228_vm0, 0.0, %v226_v1  ;;  %v2091_v1 = vmov 1  }
  0xdf   : > { %v231_v3 = vsel %vm230_vm1, %v229_v2, 0.0  ;;  %vm2090_vm1 = vmmov 0  }
  0xe0   : > { %236 = vrot.lane.b32.xlu1 %v231_v3, %s2079_s24  ;;  %233 = vrot.lane.b32.xlu0 %v231_v3, %s2080_s18 }
  0xe4   : > { %239 = vrot.lane.b32.xlu1 %v231_v3, %s2081_s27  ;;  %242 = vrot.lane.b32.xlu0 %v231_v3, %s2082_s28 }
  0xe8   : > { %245 = vrot.lane.b32.xlu1 %v231_v3, %s2084_s22  ;;  %248 = vrot.lane.b32.xlu0 %v231_v3, %s2085_s4 }
  0xec   : > { %257 = vperm.xlu1 %1885, %v2318_v6   ;;  %262 = vperm.xlu0 %1886, %v2320_v7  }
  0xf0   : > { %267 = vperm.xlu1 %1885, %v222_v8   ;;  %1887 = vset.pattern.permute.xlu0 %v2091_v1 }
  0xf4   : > { %272 = vperm.xlu1 %1885, %v223_v9  }
  0xf8   : > { %1888 = vset.pattern.permute.xlu1 %v2091_v1 }
 0x152   : > { %v237_v10 = vpop.permute.xlu1 %236  ;;  %v234_v11 = vpop.permute.xlu0 %233 }
 0x153   : > { %v1496_v12 = vpack.c.bf16 %v234_v11, %v229_v2 }
 0x155   : > { %1611 = vmatprep.subr.msk.bf16.mxu0 %vm1495_vm4, %v1496_v12 }
 0x156   : > { %v240_v13 = vpop.permute.xlu1 %239  ;;  %1612 = vmatpush3.bf16.msk.msra.mxu0 %vm1495_vm4, %v1496_v12  ;;  %v243_v14 = vpop.permute.xlu0 %242 }
 0x157   : > { %v252_v15 = vpack.c.bf16 %v240_v13, %v237_v10  ;;  %v1905_v10 = vld [vmem:[#allocation5 + $0x4] ss:$48 sps:$4 sm:$0xff]  }
 0x159   : > { %1613 = vmatprep.subr.bf16.mxu0 %v252_v15 }
 0x15a   : > { %v246_v16 = vpop.permute.xlu1 %245  ;;  %1614 = vmatpush3.bf16.msra.mxu0 %v252_v15  ;;  %v249_v17 = vpop.permute.xlu0 %248 }
 0x15b   : > { %v253_v18 = vpack.c.bf16 %v246_v16, %v243_v14  ;;  %v254_v19 = vpack.c.bf16 %v249_v17, %v249_v17 }
 0x15d   : > { %1615 = vmatprep.subr.bf16.mxu0 %v253_v18  ;;  %v294_v20 = vsel %vm292_vm5, %v254_v19, 0 }
 0x15e   : > { %1616 = vmatpush3.bf16.msra.mxu0 %v253_v18 }
 0x15f   : > { %1785 = vmatprep.subr.msk.bf16.mxu0 %vm292_vm5, %v254_v19 }
 0x162   : > { %1618 = vmatpush3.bf16.msra.mxu0 %v294_v20 }
 0x163   : > { %1649 = vmatprep.subr.bf16.mxu0 %v2088_v52 }
 0x165   : > { %1620 = vmatmul.mubr.msk.bf16.vlgmr.msra.gmra.mrb[0].mxu0 %vm285_vm2, %v1904_v21 }
 0x166   : > { %1655 = vmatprep.mubr.msk.bf16.mxu0 %vm2090_vm1, %v2088_v52 }
 0x16b   : > { %v258_v30 = vpop.permute.xlu1 %257  ;;  %v263_v35 = vpop.permute.xlu0 %262 }
 0x16f   : > { %v268_v31 = vpop.permute.xlu1 %267 }
 0x173   : > { %v273_v36 = vpop.permute.xlu1 %272 }
 0x238   : > { %v1621_v32 = vpop.f32.mrb[0].mxu0 }
 0x239   : > { %v339_v33 = vadd.f32 %v1621_v32, %v268_v31  ;;  %v330_v34 = vpop.f32.mrb[1].mxu0 }
 0x23a   : > { %v331_v37 = vadd.f32 %v330_v34, %v258_v30  ;;  %v1622_v38 = vpop.f32.mrb[2].mxu0  ;;  %v2093_v34 = vmov 2  }
 0x23b   : > { %v355_v39 = vmul.f32 0.1, %v339_v33  ;;  %v342_v40 = vadd.f32 %v1622_v38, %v273_v36  ;;  %v333_v41 = vpop.f32.mrb[3].mxu0  ;;  %vm351_vm9 = vcmp.gt.f32.partialorder %v339_v33, 0.0 }
 0x23c   : > { %v353_v42 = vmul.f32 0.1, %v331_v37  ;;  %v334_v43 = vadd.f32 %v333_v41, %v263_v35  ;;  %vm349_vm11 = vcmp.gt.f32.partialorder %v331_v37, 0.0  ;;  %v2094_v35 = vmov 4  }
 0x23d   : > { %vm352_vm10 = vcmp.gt.f32.partialorder %v342_v40, 0.0  ;;  %v356_v44 = vmul.f32 0.1, %v342_v40  ;;  %v359_v46 = vsel %vm351_vm9, %v339_v33, %v355_v39  ;;  %vm627_vm9 = vcmask 277504   ;;  %v1906_v39 = vld [vmem:[#allocation5 + $0x8] ss:$48 sps:$4 sm:$0xff]  }
 0x23e   : > { %v354_v45 = vmul.f32 0.1, %v334_v43  ;;  %vm350_vm12 = vcmp.gt.f32.partialorder %v334_v43, 0.0  ;;  %v357_v49 = vsel %vm349_vm11, %v331_v37, %v353_v42  ;;  %vm730_vm11 = vcmask 654336  }
 0x23f   : > { %v360_v47 = vsel %vm352_vm10, %v342_v40, %v356_v44  ;;  %vm566_vm10 = vcmask 392192  }
 0x240   : > { %v362_v48 = vpack.c.bf16 %v360_v47, %v359_v46  ;;  %v358_v50 = vsel %vm350_vm12, %v334_v43, %v354_v45  ;;  %v1907_v43 = vld [vmem:[#allocation5 + $0x10] ss:$48 sps:$4 sm:$0xff]  }
 0x241   : > { %v361_v51 = vpack.c.bf16 %v358_v50, %v357_v49 }
 0x243   : > { %1625 = vmatprep.mubr.msk.bf16.mxu1 %vm377_vm13, %v361_v51 }
 0x244   : > { %1626 = vmatmul.mubr.msk.bf16.vlgmr.msra.gmra.mrb[0].mxu1 %vm377_vm13, %v362_v48 }
 0x245   : > { %1645 = vmatprep.mubr.msk.bf16.mxu1 %vm2090_vm1, %v2088_v52 }
 0x317   : > { %v1627_v53 = vpop.f32.mrb[0].mxu1 }
 0x318   : > { %v418_v54 = vpop.f32.mrb[1].mxu1 }
 0x319   : > { %v1628_v55 = vpop.f32.mrb[2].mxu1 }
 0x31a   : > { %v434_v56 = vpack.c.bf16 %v1628_v55, %v1627_v53  ;;  %v421_v57 = vpop.f32.mrb[3].mxu1 }
 0x31b   : > { %v433_v58 = vpack.c.bf16 %v421_v57, %v418_v54 }
 0x31c   : > { %439 = vrot.lane.b32.xlu1 %v434_v56, %s2089_s5 }
 0x31d   : > { %437 = vrot.lane.b32.xlu0 %v433_v58, %s2089_s5 }
 0x38e   : > { %v440_v59 = vpop.permute.xlu1 %439 }
 0x38f   : > { %v446_v60 = vsel %vm441_vm14, 0, %v440_v59  ;;  %v438_v61 = vpop.permute.xlu0 %437 }
 0x390   : > { %v450_v62 = vsel %vm447_vm15, %v446_v60, 0  ;;  %v444_v63 = vsel %vm441_vm14, 0, %v438_v61 }
 0x391   : > { %v448_v0 = vsel %vm447_vm15, %v444_v63, 0  ;;  %456 = vrot.lane.b32.xlu1 %v450_v62, %s2080_s18 }
 0x392   : > { %454 = vrot.lane.b32.xlu0 %v448_v0, %s2080_s18  ;;  %1630 = vmatpush3.bf16.msra.mxu1 %v448_v0 }
 0x393   : > { %1631 = vmatprep.subr.bf16.mxu1 %v2088_v52 }
 0x395   : > { %462 = vrot.lane.b32.xlu1 %v450_v62, %s2079_s24 }
 0x396   : > { %460 = vrot.lane.b32.xlu0 %v448_v0, %s2079_s24  ;;  %1632 = vmatpush3.bf16.msra.mxu1 %v450_v62 }
 0x397   : > { %1633 = vmatprep.subr.bf16.mxu1 %v2088_v52 }
 0x399   : > { %468 = vrot.lane.b32.xlu1 %v450_v62, %s2081_s27 }
 0x39a   : > { %466 = vrot.lane.b32.xlu0 %v448_v0, %s2081_s27 }
 0x39d   : > { %479 = vperm.xlu1 %1888, %v2320_v7  }
 0x39e   : > { %474 = vperm.xlu0 %1887, %v2318_v6  }
 0x3a1   : > { %1889 = vset.pattern.permute.xlu1 %v2093_v34 }
 0x3a2   : > { %1890 = vset.pattern.permute.xlu0 %v2093_v34 }
 0x403   : > { %v457_v3 = vpop.permute.xlu1 %456 }
 0x404   : > { %v455_v2 = vpop.permute.xlu0 %454 }
 0x405   : > { %1634 = vmatpush3.bf16.msra.mxu1 %v455_v2 }
 0x406   : > { %1635 = vmatprep.subr.bf16.mxu1 %v2088_v52 }
 0x407   : > { %v463_v5 = vpop.permute.xlu1 %462 }
 0x408   : > { %v461_v4 = vpop.permute.xlu0 %460 }
 0x409   : > { %1636 = vmatpush3.bf16.msra.mxu1 %v457_v3 }
 0x40a   : > { %1637 = vmatprep.subr.bf16.mxu1 %v2088_v52 }
 0x40b   : > { %v469_v9 = vpop.permute.xlu1 %468 }
 0x40c   : > { %v467_v8 = vpop.permute.xlu0 %466 }
 0x40d   : > { %1638 = vmatpush3.bf16.msra.mxu1 %v461_v4 }
 0x40e   : > { %1639 = vmatprep.subr.bf16.mxu1 %v2088_v52 }
 0x411   : > { %1640 = vmatpush3.bf16.msra.mxu1 %v463_v5 }
 0x412   : > { %1641 = vmatprep.subr.bf16.mxu1 %v2088_v52 }
 0x415   : > { %1642 = vmatpush3.bf16.msra.mxu1 %v467_v8  ;;  %v2095_v8 = vmov 3  }
 0x416   : > { %1643 = vmatprep.subr.bf16.mxu1 %v2088_v52 }
 0x419   : > { %1644 = vmatpush3.bf16.msra.mxu1 %v469_v9 }
 0x41a   : > { %1669 = vmatprep.subr.bf16.mxu1 %v2088_v52 }
 0x41c   : > { %1646 = vmatmul.mubr.bf16.vlgmr.msra.gmra.mrb[4].mxu1 %v1905_v10  ;;  %v480_v13 = vpop.permute.xlu1 %479 }
 0x41d   : > { %1679 = vmatprep.mubr.msk.bf16.mxu1 %vm2090_vm1, %v2088_v52  ;;  %v475_v11 = vpop.permute.xlu0 %474 }
 0x4ef   : > { %v522_v12 = vpop.f32.mrb[4].mxu1 }
 0x4f0   : > { %v2377_v14 = vadd.f32 %v522_v12, %v475_v11  ;;  %v1647_v15 = vpop.f32.mrb[5].mxu1 }
 0x4f1   : > { %v525_v16 = vpop.f32.mrb[6].mxu1 }
 0x4f2   : > { %v2379_v17 = vadd.f32 %v525_v16, %v480_v13  ;;  %v1648_v18 = vpop.f32.mrb[7].mxu1  ;;  %v533_v19 = vmul.f32 0.1, %v2377_v14  ;;  %vm531_vm4 = vcmp.gt.f32.partialorder %v2377_v14, 0.0 }
 0x4f4   : > { %vm532_vm6 = vcmp.gt.f32.partialorder %v2379_v17, 0.0  ;;  %v534_v20 = vmul.f32 0.1, %v2379_v17  ;;  %v535_v21 = vsel %vm531_vm4, %v2377_v14, %v533_v19  ;;  %vm789_vm4 = vcmask 48128  }
 0x4f5   : > { %v2099_v19 = vmov 5  }
 0x4f6   : > { %v536_v22 = vsel %vm532_vm6, %v2379_v17, %v534_v20  ;;  %vm792_vm6 = vcmask 310272  }
 0x4f7   : > { %v537_v24 = vpack.c.bf16 %v536_v22, %v535_v21  ;;  %v1908_v22 = vld [vmem:[#allocation5 + $0xc] ss:$48 sps:$4 sm:$0xff]  }
 0x4f9   : > { %698 = vrot.lane.b32.xlu0 %v537_v24, %s2089_s5  ;;  %539 = vrot.lane.b32.xlu1 %v537_v24, %s2092_s7 }
 0x56b   : > { %v699_v26 = vpop.permute.xlu0 %698  ;;  %v540_v27 = vpop.permute.xlu1 %539 }
 0x56c   : > { %v701_v30 = vsel %vm441_vm14, 0, %v699_v26  ;;  %v543_v31 = vsel %vm541_vm7, 0, %v540_v27 }
 0x56d   : > { %v702_v32 = vsel %vm627_vm9, %v701_v30, 0  ;;  %v544_v33 = vsel %vm447_vm15, %v543_v31, 0  ;;  %v1909_v30 = vld [vmem:[#allocation5 + $0x14] ss:$48 sps:$4 sm:$0xff]   ;;  %v878_v31 = vadd.s32 16, %v2329_v23 }
 0x56e   : > { %1670 = vmatpush3.bf16.msra.mxu1 %v702_v32  ;;  %550 = vrot.lane.b32.xlu0 %v544_v33, %s2079_s24 }
 0x56f   : > { %547 = vrot.lane.b32.xlu1 %v544_v33, %s2080_s18  ;;  %1650 = vmatpush3.bf16.msra.mxu0 %v544_v33  ;;  %v880_v33 = vmul.u32 2, %v878_v31 }
 0x570   : > { %1651 = vmatprep.subr.bf16.mxu0 %v2088_v52  ;;  %1671 = vmatprep.subr.bf16.mxu1 %v2088_v52 }
 0x572   : > { %708 = vrot.lane.b32.xlu0 %v702_v32, %s2079_s24 }
 0x573   : > { %705 = vrot.lane.b32.xlu1 %v702_v32, %s2080_s18 }
 0x576   : > { %714 = vrot.lane.b32.xlu0 %v702_v32, %s2082_s28 }
 0x577   : > { %711 = vrot.lane.b32.xlu1 %v702_v32, %s2081_s27  ;;  %v879_v32 = vadd.s32 24, %v2329_v23 }
 0x579   : > { %v881_v34 = vmul.u32 2, %v879_v32  ;;  %v1002_v32 = vld [vmem:[#allocation5 + $0x1c] sm:$0xf] }
 0x57a   : > { %558 = vperm.xlu0 %1890, %v2320_v7  }
 0x57b   : > { %554 = vperm.xlu1 %1889, %v2318_v6  }
 0x57e   : > { %1892 = vset.pattern.permute.xlu0 %v2095_v8 }
 0x57f   : > { %1891 = vset.pattern.permute.xlu1 %v2094_v35 }
 0x580   : > { %718 = vperm.xlu1 %1891, %v2318_v6  }
 0x584   : > { %722 = vperm.xlu1 %1891, %v2320_v7  }
 0x588   : > { %1893 = vset.pattern.permute.xlu1 %v2095_v8 }
 0x5e0   : > { %v551_v37 = vpop.permute.xlu0 %550 }
 0x5e1   : > { %v548_v36 = vpop.permute.xlu1 %547 }
 0x5e2   : > { %1652 = vmatpush3.bf16.msra.mxu0 %v548_v36 }
 0x5e3   : > { %1653 = vmatprep.subr.bf16.mxu0 %v2088_v52 }
 0x5e4   : > { %v709_v40 = vpop.permute.xlu0 %708 }
 0x5e5   : > { %v706_v38 = vpop.permute.xlu1 %705 }
 0x5e6   : > { %1654 = vmatpush3.bf16.msra.mxu0 %v551_v37  ;;  %1672 = vmatpush3.bf16.msra.mxu1 %v706_v38 }
 0x5e7   : > { %1673 = vmatprep.subr.bf16.mxu1 %v2088_v52  ;;  %1659 = vmatprep.subr.bf16.mxu0 %v2088_v52 }
 0x5e8   : > { %v715_v42 = vpop.permute.xlu0 %714 }
 0x5e9   : > { %1656 = vmatmul.mubr.msk.bf16.vlgmr.msra.gmra.mrb[4].mxu0 %vm566_vm10, %v1906_v39  ;;  %v712_v41 = vpop.permute.xlu1 %711 }
 0x5ea   : > { %1674 = vmatpush3.bf16.msra.mxu1 %v709_v40  ;;  %1665 = vmatprep.mubr.msk.bf16.mxu0 %vm2090_vm1, %v2088_v52 }
 0x5eb   : > { %1675 = vmatprep.subr.bf16.mxu1 %v2088_v52 }
 0x5ee   : > { %1676 = vmatpush3.bf16.msra.mxu1 %v712_v41 }
 0x5ef   : > { %1677 = vmatprep.subr.bf16.mxu1 %v2088_v52 }
 0x5f2   : > { %1678 = vmatpush3.bf16.msra.mxu1 %v715_v42 }
 0x5f3   : > { %1697 = vmatprep.subr.bf16.mxu1 %v2088_v52 }
 0x5f5   : > { %1680 = vmatmul.mubr.msk.bf16.vlgmr.msra.gmra.mrb[8].mxu1 %vm730_vm11, %v1907_v43 }
 0x5f6   : > { %1698 = vmatpush3.bf16.msk.msra.mxu1 %vm2337_vm8, %v2087_v29  ;;  %1701 = vmatprep.mubr.msk.bf16.mxu1 %vm2090_vm1, %v2088_v52 }
 0x5f7   : > { %1699 = vmatprep.subr.bf16.mxu1 %v2088_v52 }
 0x5f9   : > { %v559_v46 = vpop.permute.xlu0 %558 }
 0x5fa   : > { %v555_v44 = vpop.permute.xlu1 %554 }
 0x5ff   : > { %v719_v56 = vpop.permute.xlu1 %718 }
 0x603   : > { %v723_v63 = vpop.permute.xlu1 %722 }
 0x6bc   : > { %v604_v45 = vpop.f32.mrb[4].mxu0 }
 0x6bd   : > { %v605_v47 = vadd.f32 %v604_v45, %v555_v44  ;;  %v1657_v48 = vpop.f32.mrb[5].mxu0 }
 0x6be   : > { %v607_v49 = vpop.f32.mrb[6].mxu0 }
 0x6bf   : > { %v2422_v50 = vadd.f32 %v605_v47, %v2377_v14  ;;  %v608_v51 = vadd.f32 %v607_v49, %v559_v46  ;;  %v1658_v53 = vpop.f32.mrb[7].mxu0 }
 0x6c1   : > { %v2425_v54 = vadd.f32 %v608_v51, %v2379_v17  ;;  %v617_v28 = vmul.f32 0.1, %v2422_v50  ;;  %vm615_vm8 = vcmp.gt.f32.partialorder %v2422_v50, 0.0 }
 0x6c3   : > { %vm616_vm12 = vcmp.gt.f32.partialorder %v2425_v54, 0.0  ;;  %v618_v55 = vmul.f32 0.1, %v2425_v54  ;;  %v619_v57 = vsel %vm615_vm8, %v2422_v50, %v617_v28 }
 0x6c5   : > { %v620_v58 = vsel %vm616_vm12, %v2425_v54, %v618_v55 }
 0x6c6   : > { %v621_v59 = vpack.c.bf16 %v620_v58, %v619_v57 }
 0x6c8   : > { %623 = vrot.lane.b32.xlu0 %v621_v59, %s2089_s5  ;;  %v768_v60 = vpop.f32.mrb[8].mxu1 }
 0x6c9   : > { %v769_v61 = vadd.f32 %v768_v60, %v719_v56  ;;  %v1681_v62 = vpop.f32.mrb[9].mxu1 }
 0x6ca   : > { %v771_v0 = vpop.f32.mrb[10].mxu1 }
 0x6cb   : > { %v2435_v1 = vadd.f32 %v769_v61, %v2377_v14  ;;  %v772_v2 = vadd.f32 %v771_v0, %v723_v63  ;;  %v1682_v3 = vpop.f32.mrb[11].mxu1  ;;  %v2100_v61 = vmov 6  }
 0x6cd   : > { %v2438_v4 = vadd.f32 %v772_v2, %v2379_v17  ;;  %v781_v5 = vmul.f32 0.1, %v2435_v1  ;;  %vm779_vm13 = vcmp.gt.f32.partialorder %v2435_v1, 0.0 }
 0x6cf   : > { %vm780_vm15 = vcmp.gt.f32.partialorder %v2438_v4, 0.0  ;;  %v782_v9 = vmul.f32 0.1, %v2438_v4  ;;  %v783_v10 = vsel %vm779_vm13, %v2435_v1, %v781_v5  ;;  %vm889_vm13 = vcmask 261120  }
 0x6d1   : > { %v784_v11 = vsel %vm780_vm15, %v2438_v4, %v782_v9  ;;  %vm940_vm15 = vcmask 531456  }
 0x6d2   : > { %v785_v12 = vpack.c.bf16 %v784_v11, %v783_v10 }
 0x6d4   : > { %787 = vrot.lane.b32.xlu1 %v785_v12, %s2096_s8 }
 0x73a   : > { %v624_v13 = vpop.permute.xlu0 %623 }
 0x73b   : > { %v626_v14 = vsel %vm441_vm14, 0, %v624_v13 }
 0x73c   : > { %v628_v15 = vsel %vm627_vm9, %v626_v14, 0  ;;  %vm882_vm9 = vcmp.eq.s32.totalorder %v2332_v25, %v880_v33 }
 0x73d   : > { %631 = vrot.lane.b32.xlu0 %v628_v15, %s2079_s24  ;;  %1660 = vmatpush3.bf16.msra.mxu0 %v628_v15 }
 0x73e   : > { %634 = vrot.lane.b32.xlu1 %v628_v15, %s2082_s28  ;;  %1661 = vmatprep.subr.bf16.mxu0 %v2088_v52 }
 0x746   : > { %v788_v16 = vpop.permute.xlu1 %787 }
 0x747   : > { %v791_v17 = vsel %vm789_vm4, 0, %v788_v16 }
 0x748   : > { %v793_v18 = vsel %vm792_vm6, %v791_v17, 0  ;;  %vm958_vm6 = vcmask 523264  }
 0x749   : > { %799 = vrot.lane.b32.xlu1 %v793_v18, %s2085_s4  ;;  %796 = vrot.lane.b32.xlu0 %v793_v18, %s2081_s27 }
 0x74d   : > { %805 = vrot.lane.b32.xlu1 %v793_v18, %s2097_s23  ;;  %802 = vrot.lane.b32.xlu0 %v793_v18, %s2098_s11 }
 0x751   : > { %642 = vperm.xlu1 %1893, %v2320_v7   ;;  %638 = vperm.xlu0 %1892, %v2318_v6  }
 0x755   : > { %1894 = vset.pattern.permute.xlu1 %v2099_v19  ;;  %1895 = vset.pattern.permute.xlu0 %v2099_v19  ;;  %v2102_v19 = vmov 9  }
 0x756   : > { %809 = vperm.xlu1 %1894, %v2318_v6   ;;  %813 = vperm.xlu0 %1895, %v2320_v7  }
 0x75a   : > { %1896 = vset.pattern.permute.xlu0 %v2100_v61  ;;  %1898 = vset.pattern.permute.xlu1 %v2102_v19 }
 0x7af   : > { %v632_v20 = vpop.permute.xlu0 %631 }
 0x7b0   : > { %1662 = vmatpush3.bf16.msra.mxu0 %v632_v20  ;;  %v635_v21 = vpop.permute.xlu1 %634 }
 0x7b1   : > { %1663 = vmatprep.subr.bf16.mxu0 %v2088_v52 }
 0x7b4   : > { %1664 = vmatpush3.bf16.msra.mxu0 %v635_v21 }
 0x7b5   : > { %1683 = vmatprep.subr.bf16.mxu0 %v2088_v52 }
 0x7b7   : > { %1666 = vmatmul.mubr.msk.bf16.vlgmr.msra.gmra.mrb[8].mxu0 %vm566_vm10, %v1908_v22  ;;  %vm883_vm10 = vcmp.eq.s32.totalorder %v2332_v25, %v881_v34 }
 0x7b8   : > { %1684 = vmatpush3.bf16.msra.mxu0 %v793_v18  ;;  %1693 = vmatprep.mubr.msk.bf16.mxu0 %vm2090_vm1, %v2088_v52  ;;  %vm1519_vm8 = vmpackc.low %vm883_vm10, %vm882_vm9  ;;  %vm1082_vm10 = vcmask 539648   ;;  %v2101_v18 = vmov 7  }
 0x7b9   : > { %1685 = vmatprep.subr.bf16.mxu0 %v2088_v52  ;;  %1700 = vmatpush3.bf16.msk.msra.mxu1 %vm1519_vm8, %v2087_v29  ;;  %vm2524_vm8 = vmpackc.low %vm2086_vm3, %vm1082_vm10 }
 0x7ba   : > { %1717 = vmatprep.subr.bf16.mxu1 %v2088_v52 }
 0x7bb   : > { %v797_v24 = vpop.permute.xlu0 %796  ;;  %v800_v7 = vpop.permute.xlu1 %799 }
 0x7bc   : > { %1686 = vmatpush3.bf16.msra.mxu0 %v797_v24 }
 0x7bd   : > { %1687 = vmatprep.subr.bf16.mxu0 %v2088_v52 }
 0x7bf   : > { %v803_v26 = vpop.permute.xlu0 %802  ;;  %v806_v27 = vpop.permute.xlu1 %805 }
 0x7c0   : > { %1688 = vmatpush3.bf16.msra.mxu0 %v800_v7 }
 0x7c1   : > { %1689 = vmatprep.subr.bf16.mxu0 %v2088_v52 }
 0x7c4   : > { %1690 = vmatpush3.bf16.msra.mxu0 %v803_v26 }
 0x7c5   : > { %1691 = vmatprep.subr.bf16.mxu0 %v2088_v52 }
 0x7c8   : > { %1692 = vmatpush3.bf16.msra.mxu0 %v806_v27 }
 0x7c9   : > { %1705 = vmatprep.subr.bf16.mxu0 %v2088_v52 }
 0x7cb   : > { %1694 = vmatmul.mubr.msk.bf16.vlgmr.msra.gmra.mrb[8].mxu0 %vm730_vm11, %v1909_v30 }
 0x7cc   : > { %1713 = vmatprep.mubr.msk.bf16.mxu0 %vm2090_vm1, %v2088_v52 }
 0x7d0   : > { %v639_v35 = vpop.permute.xlu0 %638  ;;  %v643_v36 = vpop.permute.xlu1 %642 }
 0x7d1   : > { %v1765_v37 = vadd.f32 %v639_v35, %v2422_v50  ;;  %v1769_v38 = vadd.f32 %v643_v36, %v2425_v54 }
 0x7d3   : > { %v1766_v39 = vadd.f32 %v1765_v37, %v2435_v1  ;;  %v1770_v40 = vadd.f32 %v1769_v38, %v2438_v4  ;;  %v869_v1 = vld [vmem:[#allocation5 + $0x18] sm:$0xf]  ;;  %v1144_v38 = vld [vmem:[#allocation5 + $0x24] sm:$0xf] }
 0x7d5   : > { %v810_v23 = vpop.permute.xlu1 %809  ;;  %v814_v41 = vpop.permute.xlu0 %813 }
 0x7d6   : > { %v1767_v42 = vadd.f32 %v1766_v39, %v810_v23  ;;  %v1771_v25 = vadd.f32 %v1770_v40, %v814_v41 }
 0x89e   : > { %v858_v43 = vpop.f32.mrb[8].mxu0 }
 0x89f   : > { %v1768_v44 = vadd.f32 %v1767_v42, %v858_v43  ;;  %v1695_v45 = vpop.f32.mrb[9].mxu0 }
 0x8a0   : > { %v861_v29 = vpop.f32.mrb[10].mxu0 }
 0x8a1   : > { %v873_v46 = vmul.f32 0.1, %v1768_v44  ;;  %v1772_v47 = vadd.f32 %v1771_v25, %v861_v29  ;;  %v1696_v48 = vpop.f32.mrb[11].mxu0  ;;  %vm871_vm11 = vcmp.gt.f32.partialorder %v1768_v44, 0.0 }
 0x8a3   : > { %vm872_vm12 = vcmp.gt.f32.partialorder %v1772_v47, 0.0  ;;  %v874_v49 = vmul.f32 0.1, %v1772_v47  ;;  %v875_v50 = vsel %vm871_vm11, %v1768_v44, %v873_v46  ;;  %vm1025_vm11 = vcmask 195584  }
 0x8a5   : > { %v876_v51 = vsel %vm872_vm12, %v1772_v47, %v874_v49  ;;  %vm1170_vm12 = vcmask 326656  }
 0x8a6   : > { %v877_v53 = vpack.c.bf16 %v876_v51, %v875_v50  ;;  %v2103_v50 = vmov 8  }
 0x8a8   : > { %1702 = vmatmul.mubr.msk.bf16.vlgmr.msra.gmra.mrb[12].mxu1 %vm889_vm13, %v877_v53 }
 0x8a9   : > { %1721 = vmatprep.mubr.msk.bf16.mxu1 %vm2090_vm1, %v2088_v52 }
 0x97b   : > { %v927_v54 = vpop.f32.mrb[12].mxu1 }
 0x97c   : > { %v1703_v28 = vpop.f32.mrb[13].mxu1 }
 0x97d   : > { %v930_v55 = vpop.f32.mrb[14].mxu1  ;;  %v2104_v28 = vmov 10  }
 0x97e   : > { %v934_v56 = vpack.c.bf16 %v930_v55, %v927_v54  ;;  %v1704_v57 = vpop.f32.mrb[15].mxu1 }
 0x980   : > { %936 = vrot.lane.b32.xlu1 %v934_v56, %s2089_s5 }
 0x9f2   : > { %v937_v58 = vpop.permute.xlu1 %936 }
 0x9f3   : > { %v939_v59 = vsel %vm441_vm14, 0, %v937_v58 }
 0x9f4   : > { %v941_v60 = vsel %vm940_vm15, %v939_v59, 0 }
 0x9f5   : > { %947 = vrot.lane.b32.xlu0 %v941_v60, %s2079_s24  ;;  %944 = vrot.lane.b32.xlu1 %v941_v60, %s2080_s18 }
 0x9f6   : > { %1706 = vmatpush3.bf16.msra.mxu0 %v941_v60 }
 0x9f7   : > { %1707 = vmatprep.subr.bf16.mxu0 %v2088_v52 }
 0x9f9   : > { %950 = vrot.lane.b32.xlu1 %v941_v60, %s2081_s27  ;;  %955 = vperm.xlu0 %1896, %v2318_v6  }
 0x9fd   : > { %1897 = vset.pattern.permute.xlu0 %v2101_v18 }
 0xa67   : > { %v945_v62 = vpop.permute.xlu1 %944  ;;  %v948_v63 = vpop.permute.xlu0 %947 }
 0xa68   : > { %1708 = vmatpush3.bf16.msra.mxu0 %v945_v62 }
 0xa69   : > { %1709 = vmatprep.subr.bf16.mxu0 %v2088_v52 }
 0xa6b   : > { %v951_v0 = vpop.permute.xlu1 %950 }
 0xa6c   : > { %1710 = vmatpush3.bf16.msra.mxu0 %v948_v63 }
 0xa6d   : > { %1711 = vmatprep.subr.bf16.mxu0 %v2088_v52 }
 0xa70   : > { %1712 = vmatpush3.bf16.msra.mxu0 %v951_v0 }
 0xa71   : > { %1733 = vmatprep.subr.bf16.mxu0 %v2088_v52 }
 0xa73   : > { %1714 = vmatmul.mubr.msk.bf16.vlgmr.msra.gmra.mrb[12].mxu0 %vm958_vm6, %v869_v1 }
 0xa74   : > { %1739 = vmatprep.mubr.msk.bf16.mxu0 %vm2090_vm1, %v2088_v52 }
 0xa78   : > { %v956_v2 = vpop.permute.xlu0 %955 }
 0xb46   : > { %v996_v3 = vpop.f32.mrb[12].mxu0 }
 0xb47   : > { %v2500_v4 = vadd.f32 %v996_v3, %v956_v2  ;;  %v1715_v5 = vpop.f32.mrb[13].mxu0  ;;  %v1073_v3 = vld [vmem:[#allocation5 + $0x20] sm:$0xf] }
 0xb48   : > { %v999_v8 = vpop.f32.mrb[14].mxu0 }
 0xb49   : > { %v1716_v9 = vpop.f32.mrb[15].mxu0  ;;  %vm1003_vm9 = vcmp.gt.f32.partialorder %v2500_v4, 0.0  ;;  %v1004_v10 = vmul.f32 0.1, %v2500_v4 }
 0xb4b   : > { %v1005_v11 = vsel %vm1003_vm9, %v2500_v4, %v1004_v10  ;;  %vm1227_vm9 = vcmask 572416  }
 0xb4c   : > { %1007 = vrot.lane.b32.xlu1 %v1005_v11, %s2092_s7 }
 0xb50   : > { %1145 = vrot.lane.b32.xlu1 %v1005_v11, %s2089_s5 }
 0xbbe   : > { %v1008_v12 = vpop.permute.xlu1 %1007 }
 0xbbf   : > { %v1010_v13 = vsel %vm541_vm7, 0.0, %v1008_v12  ;;  %vm1523_vm7 = vmpackc.low %vm2086_vm3, %vm940_vm15 }
 0xbc0   : > { %v1011_v14 = vsel %vm940_vm15, %v1010_v13, 0.0 }
 0xbc1   : > { %1016 = vrot.lane.b32.xlu1 %v1011_v14, %s2079_s24  ;;  %1013 = vrot.lane.b32.xlu0 %v1011_v14, %s2080_s18 }
 0xbc2   : > { %v1146_v15 = vpop.permute.xlu1 %1145 }
 0xbc3   : > { %v1148_v16 = vsel %vm441_vm14, 0.0, %v1146_v15 }
 0xbc4   : > { %v1149_v17 = vsel %vm1082_vm10, %v1148_v16, 0.0 }
 0xbc5   : > { %1154 = vrot.lane.b32.xlu1 %v1149_v17, %s2079_s24  ;;  %1151 = vrot.lane.b32.xlu0 %v1149_v17, %s2080_s18 }
 0xbc9   : > { %1160 = vrot.lane.b32.xlu1 %v1149_v17, %s2082_s28  ;;  %1157 = vrot.lane.b32.xlu0 %v1149_v17, %s2081_s27 }
 0xbcd   : > { %1022 = vperm.xlu0 %1897, %v2318_v6   ;;  %1167 = vperm.xlu1 %1898, %v2318_v6  }
 0xbd1   : > { %1899 = vset.pattern.permute.xlu1 %v2103_v50  ;;  %1900 = vset.pattern.permute.xlu0 %v2104_v28 }
 0xc33   : > { %v1014_v20 = vpop.permute.xlu0 %1013  ;;  %v1017_v21 = vpop.permute.xlu1 %1016 }
 0xc34   : > { %v1524_v22 = vpack.c.bf16 %v1014_v20, %v1010_v13  ;;  %v1020_v24 = vpack.c.bf16 %v1017_v21, %v1017_v21  ;;  %v1218_v13 = vld [vmem:[#allocation5 + $0x28] sm:$0xf] }
 0xc36   : > { %1718 = vmatpush3.bf16.msk.msra.mxu1 %vm1523_vm7, %v1524_v22  ;;  %v1030_v31 = vsel %vm292_vm5, %v1020_v24, 0 }
 0xc37   : > { %v1152_v7 = vpop.permute.xlu0 %1151  ;;  %v1155_v26 = vpop.permute.xlu1 %1154  ;;  %1719 = vmatprep.subr.bf16.mxu1 %v2088_v52 }
 0xc38   : > { %v1532_v30 = vpack.c.bf16 %v1152_v7, %v1148_v16 }
 0xc3a   : > { %1720 = vmatpush3.bf16.msra.mxu1 %v1030_v31  ;;  %1734 = vmatpush3.bf16.msk.msra.mxu0 %vm2524_vm8, %v1532_v30 }
 0xc3b   : > { %v1158_v33 = vpop.permute.xlu0 %1157  ;;  %v1161_v34 = vpop.permute.xlu1 %1160  ;;  %1735 = vmatprep.subr.bf16.mxu0 %v2088_v52  ;;  %1725 = vmatprep.subr.bf16.mxu1 %v2088_v52 }
 0xc3c   : > { %v1164_v35 = vpack.c.bf16 %v1158_v33, %v1155_v26  ;;  %v1165_v36 = vpack.c.bf16 %v1161_v34, %v1161_v34  ;;  %v1912_v33 = vld [vmem:[#allocation7] sm:$0xff] }
 0xc3d   : > { %1722 = vmatmul.mubr.msk.bf16.vlgmr.msra.gmra.mrb[16].mxu1 %vm1025_vm11, %v1002_v32  ;;  %v2105_v32 = vmov 11  }
 0xc3e   : > { %1736 = vmatpush3.bf16.msra.mxu0 %v1164_v35  ;;  %1729 = vmatprep.mubr.msk.bf16.mxu1 %vm2090_vm1, %v2088_v52  ;;  %v1175_v37 = vsel %vm292_vm5, %v1165_v36, 0 }
 0xc3f   : > { %1737 = vmatprep.subr.bf16.mxu0 %v2088_v52 }
 0xc42   : > { %1738 = vmatpush3.bf16.msra.mxu0 %v1175_v37 }
 0xc43   : > { %1753 = vmatprep.subr.bf16.mxu0 %v2088_v52 }
 0xc45   : > { %1740 = vmatmul.mubr.msk.bf16.vlgmr.msra.gmra.mrb[16].mxu0 %vm1170_vm12, %v1144_v38 }
 0xc46   : > { %1761 = vmatprep.mubr.msk.bf16.mxu0 %vm2090_vm1, %v2088_v52 }
 0xc4c   : > { %v1023_v39 = vpop.permute.xlu0 %1022  ;;  %v1168_v45 = vpop.permute.xlu1 %1167 }
 0xd10   : > { %v1066_v23 = vpop.f32.mrb[16].mxu1 }
 0xd11   : > { %v1067_v40 = vadd.f32 %v1066_v23, %v1023_v39  ;;  %v1723_v41 = vpop.f32.mrb[17].mxu1 }
 0xd12   : > { %v1069_v42 = vpop.f32.mrb[18].mxu1 }
 0xd13   : > { %v2543_v43 = vadd.f32 %v1067_v40, %v2500_v4  ;;  %v1724_v25 = vpop.f32.mrb[19].mxu1 }
 0xd14   : > { %v1297_v25 = vld [vmem:[#allocation5 + $0x2c] sm:$0xf] }
 0xd15   : > { %vm1074_vm13 = vcmp.gt.f32.partialorder %v2543_v43, 0.0  ;;  %v1075_v44 = vmul.f32 0.1, %v2543_v43 }
 0xd17   : > { %v1076_v29 = vsel %vm1074_vm13, %v2543_v43, %v1075_v44 }
 0xd18   : > { %v1211_v46 = vpop.f32.mrb[16].mxu0  ;;  %1078 = vrot.lane.b32.xlu1 %v1076_v29, %s2089_s5 }
 0xd19   : > { %v1212_v47 = vadd.f32 %v1211_v46, %v1168_v45  ;;  %v1741_v48 = vpop.f32.mrb[17].mxu0 }
 0xd1a   : > { %v1214_v49 = vpop.f32.mrb[18].mxu0 }
 0xd1b   : > { %v1217_v51 = vadd.f32 %v1212_v47, %v2500_v4  ;;  %v1742_v53 = vpop.f32.mrb[19].mxu0 }
 0xd1d   : > { %vm1219_vm15 = vcmp.gt.f32.partialorder %v1217_v51, 0.0  ;;  %v1220_v54 = vmul.f32 0.1, %v1217_v51 }
 0xd1f   : > { %v1221_v55 = vsel %vm1219_vm15, %v1217_v51, %v1220_v54 }
 0xd20   : > { %1223 = vrot.lane.b32.xlu0 %v1221_v55, %s2096_s8 }
 0xd8a   : > { %v1079_v56 = vpop.permute.xlu1 %1078 }
 0xd8b   : > { %v1081_v57 = vsel %vm441_vm14, 0.0, %v1079_v56  ;;  %vm1535_vm14 = vmpackc.low %vm2086_vm3, %vm1227_vm9 }
 0xd8c   : > { %v1083_v58 = vsel %vm1082_vm10, %v1081_v57, 0.0 }
 0xd8d   : > { %1088 = vrot.lane.b32.xlu0 %v1083_v58, %s2082_s28  ;;  %1085 = vrot.lane.b32.xlu1 %v1083_v58, %s2079_s24 }
 0xd92   : > { %v1224_v59 = vpop.permute.xlu0 %1223 }
 0xd93   : > { %v1226_v60 = vsel %vm789_vm4, 0.0, %v1224_v59  ;;  %vm1306_vm4 = vcmask 547840  }
 0xd94   : > { %v1228_v61 = vsel %vm1227_vm9, %v1226_v60, 0.0 }
 0xd95   : > { %1233 = vrot.lane.b32.xlu0 %v1228_v61, %s2085_s4  ;;  %1230 = vrot.lane.b32.xlu1 %v1228_v61, %s2081_s27 }
 0xd99   : > { %1239 = vrot.lane.b32.xlu0 %v1228_v61, %s2097_s23  ;;  %1236 = vrot.lane.b32.xlu1 %v1228_v61, %s2098_s11 }
 0xd9d   : > { %1094 = vperm.xlu1 %1899, %v2318_v6   ;;  %1246 = vperm.xlu0 %1900, %v2318_v6  }
 0xda1   : > { %1901 = vset.pattern.permute.xlu1 %v2105_v32  ;;  %1902 = vset.pattern.permute.xlu0 %v2105_v32 }
 0xdff   : > { %v1089_v62 = vpop.permute.xlu0 %1088  ;;  %v1086_v63 = vpop.permute.xlu1 %1085 }
 0xe00   : > { %v1528_v0 = vpack.c.bf16 %v1086_v63, %v1081_v57  ;;  %v1092_v1 = vpack.c.bf16 %v1089_v62, %v1089_v62 }
 0xe02   : > { %1726 = vmatpush3.bf16.msk.msra.mxu1 %vm2524_vm8, %v1528_v0  ;;  %v1101_v2 = vsel %vm292_vm5, %v1092_v1, 0 }
 0xe03   : > { %1727 = vmatprep.subr.bf16.mxu1 %v2088_v52 }
 0xe06   : > { %1728 = vmatpush3.bf16.msra.mxu1 %v1101_v2 }
 0xe07   : > { %v1234_v4 = vpop.permute.xlu0 %1233  ;;  %v1231_v5 = vpop.permute.xlu1 %1230  ;;  %1743 = vmatprep.subr.bf16.mxu1 %v2088_v52 }
 0xe08   : > { %v1536_v6 = vpack.c.bf16 %v1231_v5, %v1226_v60 }
 0xe09   : > { %1730 = vmatmul.mubr.msk.bf16.vlgmr.msra.gmra.mrb[20].mxu1 %vm1025_vm11, %v1073_v3 }
 0xe0a   : > { %1744 = vmatpush3.bf16.msk.msra.mxu1 %vm1535_vm14, %v1536_v6  ;;  %1749 = vmatprep.mubr.msk.bf16.mxu1 %vm2090_vm1, %v2088_v52 }
 0xe0b   : > { %v1240_v8 = vpop.permute.xlu0 %1239  ;;  %v1237_v9 = vpop.permute.xlu1 %1236  ;;  %1745 = vmatprep.subr.bf16.mxu1 %v2088_v52 }
 0xe0c   : > { %v1243_v10 = vpack.c.bf16 %v1237_v9, %v1234_v4  ;;  %v1244_v11 = vpack.c.bf16 %v1240_v8, %v1240_v8 }
 0xe0e   : > { %1746 = vmatpush3.bf16.msra.mxu1 %v1243_v10  ;;  %v1253_v12 = vsel %vm292_vm5, %v1244_v11, 0 }
 0xe0f   : > { %1747 = vmatprep.subr.bf16.mxu1 %v2088_v52 }
 0xe12   : > { %1748 = vmatpush3.bf16.msra.mxu1 %v1253_v12 }
 0xe15   : > { %1750 = vmatmul.mubr.msk.bf16.vlgmr.msra.gmra.mrb[20].mxu1 %vm1170_vm12, %v1218_v13 }
 0xe1c   : > { %v1095_v14 = vpop.permute.xlu1 %1094  ;;  %v1247_v17 = vpop.permute.xlu0 %1246 }
 0xe1d   : > { %v1773_v15 = vadd.f32 %v1095_v14, %v2543_v43 }
 0xe1f   : > { %v1774_v16 = vadd.f32 %v1773_v15, %v1217_v51 }
 0xe21   : > { %v1775_v18 = vadd.f32 %v1774_v16, %v1247_v17 }
 0xee8   : > { %v1289_v19 = vpop.f32.mrb[20].mxu1 }
 0xee9   : > { %v1776_v20 = vadd.f32 %v1775_v18, %v1289_v19  ;;  %v1751_v21 = vpop.f32.mrb[21].mxu1 }
 0xeea   : > { %v1292_v22 = vpop.f32.mrb[22].mxu1 }
 0xeeb   : > { %v1299_v24 = vmul.f32 0.01, %v1776_v20  ;;  %v1752_v7 = vpop.f32.mrb[23].mxu1  ;;  %vm1298_vm1 = vcmp.gt.f32.partialorder %v1776_v20, 0.0 }
 0xeed   : > { %v1300_v26 = vsel %vm1298_vm1, %v1776_v20, %v1299_v24 }
 0xeee   : > { %1302 = vrot.lane.b32.xlu1 %v1300_v26, %s2078_s20  ;;  %s2599_s20 = scalar_lea.hbm %s2647_s3, %s1543_s25 }
 0xf60   : > { %v1303_v27 = vpop.permute.xlu1 %1302 }
 0xf61   : > { %v1305_v30 = vsel %vm228_vm0, 0.0, %v1303_v27  ;;  %vm1539_vm0 = vmpackc.low %vm2086_vm3, %vm1306_vm4 }
 0xf62   : > { %v1307_v31 = vsel %vm1306_vm4, %v1305_v30, 0.0 }
 0xf63   : > { %1312 = vrot.lane.b32.xlu0 %v1307_v31, %s2079_s24  ;;  %1309 = vrot.lane.b32.xlu1 %v1307_v31, %s2080_s18  ;;  %s1385_s24 = scalar_lea.sflag [#allocation4], %s2296_s21  ;;  %s1999_s18 = scalar_lea.vmem %s2601_s26, 16 }
 0xf64   : > { %p2000_p8 = scmp.ne.s32.totalorder %s2601_s26, %s1999_s18 }
 0xf66   : > { %p2001_p1 = pnand %p2000_p8, %p2665_p0 }
 0xf67   : > { %1318 = vrot.lane.b32.xlu0 %v1307_v31, %s2082_s28  ;;  %1315 = vrot.lane.b32.xlu1 %v1307_v31, %s2081_s27  ;;  %s2003_s27 = sshll.u32 %s2106_s16, 4  ;;  %s2004_s27 = int_to_ptr.vmem [resolvable:$false] %s2003_s27 }
 0xf68   : > { %p2002_p3 = pneg %p2001_p1  ;;  %s2005_s28 = scalar_lea.vmem %s2004_s27, 32 }
 0xf69   : > { %p2006_p5 = scmp.lt.s32.totalorder %s2601_s26, %s2004_s27  ;;  %p2007_p9 = scmp.lt.s32.totalorder %s2005_s28, %s1999_s18 }
 0xf6b   : > { %1324 = vrot.lane.b32.xlu0 %v1307_v31, %s2085_s4  ;;  %1321 = vrot.lane.b32.xlu1 %v1307_v31, %s2084_s22  ;;  %p2008_p12 = por %p2007_p9, %p2006_p5 }
 0xf6d   : > { %p2009_p2 = pnand %p2008_p12, %p2002_p3 }
 0xf6f   : > { %1332 = vperm.xlu1 %1901, %v1912_v33  }
 0xfd5   : > { %v1313_v34 = vpop.permute.xlu0 %1312  ;;  %v1310_v35 = vpop.permute.xlu1 %1309 }
 0xfd6   : > { %v1540_v36 = vpack.c.bf16 %v1310_v35, %v1305_v30 }
 0xfd8   : > { %1754 = vmatpush3.bf16.msk.msra.mxu0 %vm1539_vm0, %v1540_v36 }
 0xfd9   : > { %v1319_v37 = vpop.permute.xlu0 %1318  ;;  %v1316_v38 = vpop.permute.xlu1 %1315  ;;  %1755 = vmatprep.subr.bf16.mxu0 %v2088_v52 }
 0xfda   : > { %v1328_v39 = vpack.c.bf16 %v1316_v38, %v1313_v34 }
 0xfdc   : > { %1756 = vmatpush3.bf16.msra.mxu0 %v1328_v39 }
 0xfdd   : > { %v1325_v23 = vpop.permute.xlu0 %1324  ;;  %v1322_v40 = vpop.permute.xlu1 %1321  ;;  %1757 = vmatprep.subr.bf16.mxu0 %v2088_v52 }
 0xfde   : > { %v1329_v41 = vpack.c.bf16 %v1322_v40, %v1319_v37  ;;  %v1330_v42 = vpack.c.bf16 %v1325_v23, %v1325_v23 }
 0xfe0   : > { %1758 = vmatpush3.bf16.msra.mxu0 %v1329_v41  ;;  %v1339_v43 = vsel %vm292_vm5, %v1330_v42, 0 }
 0xfe1   : > { %1759 = vmatprep.subr.bf16.mxu0 %v2088_v52 }
 0xfe4   : > { %1760 = vmatpush3.bf16.msra.mxu0 %v1339_v43 }
 0xfe7   : > { %1762 = vmatmul.mubr.msk.bf16.vlgmr.msra.gmra.mrb[20].mxu0 %vm285_vm2, %v1297_v25 }
 0xfee   : > { %v1333_v44 = vpop.permute.xlu1 %1332 }
0x10ba   : > { %v1375_v45 = vpop.f32.mrb[20].mxu0 }
0x10bb   : > { %v1763_v29 = vpop.f32.mrb[21].mxu0  ;;  %v1376_v46 = vadd.f32 %v1375_v45, %v1333_v44 }
0x10bc   : > { %v1378_v47 = vpop.f32.mrb[22].mxu0 }
0x10bd   : > { %1910 = vtanh.f32 %v1376_v46  ;;  %v1764_v48 = vpop.f32.mrb[23].mxu0 }
0x10c7   : > { %v1911_v49 = vpop.eup %1910 }
0x10c8   : > { %v1382_v52 = vsel %vm958_vm6, %v1911_v49, 0.0 }
0x10c9   : > { %1383 = vst [vmem:[%s213_s17] sm:$0x1] %v1382_v52 }
0x10ca   : > { %2012 = shalt.err (!%p2009_p2)
}
0x10cb   : > { %s2013_s21 = scalar_lea.hbm %s2599_s20, 16  ;;  %s2017_s5 = scalar_lea.hbm %s2647_s3, 32 }
0x10cc   : > { %p2014_p13 = scmp.ne.s32.totalorder %s2599_s20, %s2013_s21  ;;  %p2018_p4 = scmp.lt.u32.totalorder %s2599_s20, %s2647_s3 }
0x10cd   : > { %p2019_p7 = scmp.lt.u32.totalorder %s2017_s5, %s2013_s21  ;;  %p2021_p8 = scmp.lt.u32.totalorder %s2013_s21, %s2599_s20 }
0x10ce   : > { %p2015_p6 = pnand %p2014_p13, %p2665_p0 }
0x10cf   : > { %p2020_p11 = por %p2019_p7, %p2018_p4 }
0x10d0   : > { %p2016_p10 = pneg %p2015_p6 }
0x10d1   : > { %p2022_p1 = por %p2021_p8, %p2020_p11 }
0x10d3   : > { %p2023_p3 = pnand %p2022_p1, %p2016_p10 }
0x10d5   : > { %2026 = shalt.err (!%p2023_p3)
}
0x10d6   : > { %1796 = dma.vmem_to_hbm [thread:$0]  (%p2665_p0), %s2601_s26, 16, %s2599_s20, %s1385_s24  }
0x10d7 PF: > { %s1409_s23 = sand.u32 1, %s2057_s12   ;;  %p2666_p5 = scmp.ne.s32.totalorder %s2652_s19, 0 }
0x10d8   : > { %p2667_p9 = scmp.ge.s32.totalorder %s2069_s15, 2  ;;  %s1410_s11 = scalar_lea.sflag [#allocation4], %s1409_s23 }
0x10da   : > { %p1810_p12 = pnand %p2667_p9, %p2666_p5 }
0x10dc   : > { %2052 = dma.done.wait (!%p1810_p12), %s1410_s11, 16  }
0x10dd   : > { %2054 = vsyncadd (!%p1810_p12), %s1410_s11, 4294967280  ;;  %p17_p2 = scmp.ge.s32.totalorder %s2237_s6, 4   ;;  %s2668_s12 = smov %s2061_s13 }
0x10de   : > { %s2669_s13 = smov %s2065_s14  ;;  %s2670_s14 = smov %s2246_s9 }
0x10df   : > { %s2671_s15 = smov %s2237_s6  ;;  %19 = sbr.rel (!%p17_p2) target bundleno = 6 (0x6), region = 85 }
0x10e6   :  { %1414 = vsyncpa [#allocation3], 1 }
0x10e7   :  { %1416 = vsyncpa [#allocation3 + $0x1], 1 }
0x10e8   :  { %1417 = vsyncpa [#allocation6], 1 }
0x10e9   :  { %1418 = vsyncpa [#allocation4], 1 }
0x10ea   :  { %1420 = vsyncpa [#allocation4 + $0x1], 1 }

</bundles_post_ra>
